<compile_context>
chip_gen: v7x
topology: tpu7x:2x2x1
jax: 0.10.0
libtpu: 0.0.40
codegen_flags: <defaults>
</compile_context>

<pallas_src>
import math

import jax
import jax.numpy as jnp
from jax.experimental import pallas as pl
from jax.experimental.pallas import tpu as pltpu

HIDDEN = 64
LANES = 128
MAX_TILE_ROWS = 128          # (128, 128) f32 tile = 64 KiB per pipeline buffer


def _round_up(x, m):
    return (x + m - 1) // m * m


def _make_kernel(tile_r, chunk):
    n_chunks = tile_r // chunk

    def kernel(x_ref, w1_ref, b1_ref, w2_ref, b2_ref, o_ref):
        # x_ref / o_ref : (tile_r, 128) f32 VMEM blocks, batch dense on sublanes+lanes.
        # w1_ref/b1_ref/w2_ref : (64,) f32 in SMEM.  b2_ref : (1,) f32 in SMEM (bias - 5).
        bias = b2_ref[0]
        for c in range(n_chunks):              # small row chunks keep vreg pressure low
            sl = slice(c * chunk, (c + 1) * chunk)
            logx = jnp.log(x_ref[sl, :])                       # (chunk, 128)  -> EUP
            acc = jnp.full((chunk, LANES), bias, jnp.float32)
            for j in range(HIDDEN):
                # Linear(1->64) + ReLU + Linear(64->1), one hidden unit at a time;
                # scalar weights broadcast from SMEM, all ops full-vreg VPU work.
                h = jnp.maximum(logx * w1_ref[j] + b1_ref[j], 0.0)
                acc = acc + h * w2_ref[j]
            o_ref[sl, :] = jnp.exp(acc)                        # EUP + dense full-width store

    return kernel


def temperature_forward(uncertain, w1, b1, w2, b2):
    """uncertain: (..., 1) f32 (positive). Returns same shape, f32."""
    orig_shape = uncertain.shape
    x = uncertain.astype(jnp.float32).reshape(-1)
    B = x.shape[0]

    rows = -(-B // LANES)                                   # ceil(B / 128)
    tile_r = min(MAX_TILE_ROWS, max(8, pl.next_power_of_2(rows)))
    rows_pad = _round_up(rows, tile_r)
    total = rows_pad * LANES

    # Pad with 1.0 so log() on padded slots stays finite; padded outputs are dropped.
    x_pad = jnp.pad(x, (0, total - B), constant_values=1.0)
    x2d = x_pad.reshape(rows_pad, LANES)

    # Weights as flat SMEM scalars; fold the constant "-5" into the second bias.
    w1_s = w1.reshape(HIDDEN).astype(jnp.float32)           # l1.weight is (64, 1)
    b1_s = b1.reshape(HIDDEN).astype(jnp.float32)
    w2_s = w2.reshape(HIDDEN).astype(jnp.float32)           # l2.weight is (1, 64)
    b2m5 = (b2.reshape(1) - 5.0).astype(jnp.float32)

    chunk = min(32, tile_r)
    grid = (rows_pad // tile_r,)
    smem = pl.BlockSpec(memory_space=pltpu.MemorySpace.SMEM)

    out2d = pl.pallas_call(
        _make_kernel(tile_r, chunk),
        out_shape=jax.ShapeDtypeStruct((rows_pad, LANES), jnp.float32),
        grid=grid,
        in_specs=[
            pl.BlockSpec((tile_r, LANES), lambda i: (i, 0)),
            smem, smem, smem, smem,
        ],
        out_specs=pl.BlockSpec((tile_r, LANES), lambda i: (i, 0)),
        compiler_params=pltpu.CompilerParams(
            dimension_semantics=("parallel",),         # megacore sharding on v7x
            vmem_limit_bytes=32 * 1024 * 1024,          # plenty of headroom; blocks ~64 KiB
        ),
    )(x2d, w1_s, b1_s, w2_s, b2m5)

    return out2d.reshape(-1)[:B].reshape(orig_shape)


def init_params(key):
    """Deterministic init mimicking PyTorch nn.Linear defaults."""
    k1, k2, k3, k4 = jax.random.split(key, 4)
    bound1 = 1.0 / math.sqrt(1.0)
    w1 = jax.random.uniform(k1, (HIDDEN, 1), jnp.float32, -bound1, bound1)
    b1 = jax.random.uniform(k2, (HIDDEN,), jnp.float32, -bound1, bound1)
    bound2 = 1.0 / math.sqrt(HIDDEN)
    w2 = jax.random.uniform(k3, (1, HIDDEN), jnp.float32, -bound2, bound2)
    b2 = jax.random.uniform(k4, (1,), jnp.float32, -bound2, bound2)
    return w1, b1, w2, b2


def reference_forward(uncertain, w1, b1, w2, b2):
    # Pure-JAX reference matching the PyTorch semantics exactly.
    h = jnp.maximum(jnp.log(uncertain) @ w1.T + b1, 0.0)
    t = h @ w2.T + b2 - 5.0
    return jnp.exp(t)


if __name__ == "__main__":
    key = jax.random.PRNGKey(0)
    pkey, xkey = jax.random.split(key)
    w1, b1, w2, b2 = init_params(pkey)

    # Small case (matches the module's toy usage) + a larger case that exercises
    # padding, row-chunking, and a multi-step parallel grid.
    for B in (8, 20000):
        xk = jax.random.fold_in(xkey, B)
        # "uncertain" must be positive (it is log()'d in the forward pass).
        uncertain = jax.random.uniform(xk, (B, 1), jnp.float32, 0.1, 2.0)

        out = jax.block_until_ready(temperature_forward(uncertain, w1, b1, w2, b2))
        ref = reference_forward(uncertain, w1, b1, w2, b2)

        assert out.shape == (B, 1)
        assert jnp.allclose(out, ref, rtol=1e-4, atol=1e-6), (B, out[:4], ref[:4])

    print("KERNEL_OK")
</pallas_src>

<mosaic_0001>
module attributes {stable_mosaic.version = 11 : i64} {
  func.func @kernel(%arg0: i32, %arg1: memref<8x128xf32, #tpu.memory_space<vmem>>, %arg2: memref<64xf32, #tpu.memory_space<smem>>, %arg3: memref<64xf32, #tpu.memory_space<smem>>, %arg4: memref<64xf32, #tpu.memory_space<smem>>, %arg5: memref<1xf32, #tpu.memory_space<smem>>, %arg6: memref<8x128xf32, #tpu.memory_space<vmem>>) attributes {dimension_semantics = [#tpu.dimension_semantics<parallel>], iteration_bounds = array<i64: 1>, scalar_prefetch = 0 : i64, scratch_operands = 0 : i64, tpu.core_type = #tpu.core_type<tc>, window_params = [{transform_indices = @transform_0, window_bounds = array<i64: 8, 128>}, {transform_indices = @transform_1, window_bounds = array<i64: 64>}, {transform_indices = @transform_2, window_bounds = array<i64: 64>}, {transform_indices = @transform_3, window_bounds = array<i64: 64>}, {transform_indices = @transform_4, window_bounds = array<i64: 1>}, {transform_indices = @transform_5, window_bounds = array<i64: 8, 128>}]} {
    %c0 = arith.constant 0 : index
    %0 = memref.load %arg5[%c0] : memref<1xf32, #tpu.memory_space<smem>>
    %c0_0 = arith.constant 0 : index
    %c0_1 = arith.constant 0 : index
    %1 = vector.load %arg1[%c0_0, %c0_1] : memref<8x128xf32, #tpu.memory_space<vmem>>, vector<8x128xf32>
    %2 = math.log %1 : vector<8x128xf32>
    %3 = vector.broadcast %0 : f32 to vector<8x128xf32>
    %c0_2 = arith.constant 0 : index
    %4 = memref.load %arg2[%c0_2] : memref<64xf32, #tpu.memory_space<smem>>
    %5 = vector.broadcast %4 : f32 to vector<8x128xf32>
    %6 = arith.mulf %2, %5 : vector<8x128xf32>
    %c0_3 = arith.constant 0 : index
    %7 = memref.load %arg3[%c0_3] : memref<64xf32, #tpu.memory_space<smem>>
    %8 = vector.broadcast %7 : f32 to vector<8x128xf32>
    %9 = arith.addf %6, %8 : vector<8x128xf32>
    %cst = arith.constant 0.000000e+00 : f32
    %10 = vector.broadcast %cst : f32 to vector<8x128xf32>
    %11 = arith.maximumf %9, %10 : vector<8x128xf32>
    %c0_4 = arith.constant 0 : index
    %12 = memref.load %arg4[%c0_4] : memref<64xf32, #tpu.memory_space<smem>>
    %13 = vector.broadcast %12 : f32 to vector<8x128xf32>
    %14 = arith.mulf %11, %13 : vector<8x128xf32>
    %15 = arith.addf %3, %14 : vector<8x128xf32>
    %c1 = arith.constant 1 : index
    %16 = memref.load %arg2[%c1] : memref<64xf32, #tpu.memory_space<smem>>
    %17 = vector.broadcast %16 : f32 to vector<8x128xf32>
    %18 = arith.mulf %2, %17 : vector<8x128xf32>
    %c1_5 = arith.constant 1 : index
    %19 = memref.load %arg3[%c1_5] : memref<64xf32, #tpu.memory_space<smem>>
    %20 = vector.broadcast %19 : f32 to vector<8x128xf32>
    %21 = arith.addf %18, %20 : vector<8x128xf32>
    %cst_6 = arith.constant 0.000000e+00 : f32
    %22 = vector.broadcast %cst_6 : f32 to vector<8x128xf32>
    %23 = arith.maximumf %21, %22 : vector<8x128xf32>
    %c1_7 = arith.constant 1 : index
    %24 = memref.load %arg4[%c1_7] : memref<64xf32, #tpu.memory_space<smem>>
    %25 = vector.broadcast %24 : f32 to vector<8x128xf32>
    %26 = arith.mulf %23, %25 : vector<8x128xf32>
    %27 = arith.addf %15, %26 : vector<8x128xf32>
    %c2 = arith.constant 2 : index
    %28 = memref.load %arg2[%c2] : memref<64xf32, #tpu.memory_space<smem>>
    %29 = vector.broadcast %28 : f32 to vector<8x128xf32>
    %30 = arith.mulf %2, %29 : vector<8x128xf32>
    %c2_8 = arith.constant 2 : index
    %31 = memref.load %arg3[%c2_8] : memref<64xf32, #tpu.memory_space<smem>>
    %32 = vector.broadcast %31 : f32 to vector<8x128xf32>
    %33 = arith.addf %30, %32 : vector<8x128xf32>
    %cst_9 = arith.constant 0.000000e+00 : f32
    %34 = vector.broadcast %cst_9 : f32 to vector<8x128xf32>
    %35 = arith.maximumf %33, %34 : vector<8x128xf32>
    %c2_10 = arith.constant 2 : index
    %36 = memref.load %arg4[%c2_10] : memref<64xf32, #tpu.memory_space<smem>>
    %37 = vector.broadcast %36 : f32 to vector<8x128xf32>
    %38 = arith.mulf %35, %37 : vector<8x128xf32>
    %39 = arith.addf %27, %38 : vector<8x128xf32>
    %c3 = arith.constant 3 : index
    %40 = memref.load %arg2[%c3] : memref<64xf32, #tpu.memory_space<smem>>
    %41 = vector.broadcast %40 : f32 to vector<8x128xf32>
    %42 = arith.mulf %2, %41 : vector<8x128xf32>
    %c3_11 = arith.constant 3 : index
    %43 = memref.load %arg3[%c3_11] : memref<64xf32, #tpu.memory_space<smem>>
    %44 = vector.broadcast %43 : f32 to vector<8x128xf32>
    %45 = arith.addf %42, %44 : vector<8x128xf32>
    %cst_12 = arith.constant 0.000000e+00 : f32
    %46 = vector.broadcast %cst_12 : f32 to vector<8x128xf32>
    %47 = arith.maximumf %45, %46 : vector<8x128xf32>
    %c3_13 = arith.constant 3 : index
    %48 = memref.load %arg4[%c3_13] : memref<64xf32, #tpu.memory_space<smem>>
    %49 = vector.broadcast %48 : f32 to vector<8x128xf32>
    %50 = arith.mulf %47, %49 : vector<8x128xf32>
    %51 = arith.addf %39, %50 : vector<8x128xf32>
    %c4 = arith.constant 4 : index
    %52 = memref.load %arg2[%c4] : memref<64xf32, #tpu.memory_space<smem>>
    %53 = vector.broadcast %52 : f32 to vector<8x128xf32>
    %54 = arith.mulf %2, %53 : vector<8x128xf32>
    %c4_14 = arith.constant 4 : index
    %55 = memref.load %arg3[%c4_14] : memref<64xf32, #tpu.memory_space<smem>>
    %56 = vector.broadcast %55 : f32 to vector<8x128xf32>
    %57 = arith.addf %54, %56 : vector<8x128xf32>
    %cst_15 = arith.constant 0.000000e+00 : f32
    %58 = vector.broadcast %cst_15 : f32 to vector<8x128xf32>
    %59 = arith.maximumf %57, %58 : vector<8x128xf32>
    %c4_16 = arith.constant 4 : index
    %60 = memref.load %arg4[%c4_16] : memref<64xf32, #tpu.memory_space<smem>>
    %61 = vector.broadcast %60 : f32 to vector<8x128xf32>
    %62 = arith.mulf %59, %61 : vector<8x128xf32>
    %63 = arith.addf %51, %62 : vector<8x128xf32>
    %c5 = arith.constant 5 : index
    %64 = memref.load %arg2[%c5] : memref<64xf32, #tpu.memory_space<smem>>
    %65 = vector.broadcast %64 : f32 to vector<8x128xf32>
    %66 = arith.mulf %2, %65 : vector<8x128xf32>
    %c5_17 = arith.constant 5 : index
    %67 = memref.load %arg3[%c5_17] : memref<64xf32, #tpu.memory_space<smem>>
    %68 = vector.broadcast %67 : f32 to vector<8x128xf32>
    %69 = arith.addf %66, %68 : vector<8x128xf32>
    %cst_18 = arith.constant 0.000000e+00 : f32
    %70 = vector.broadcast %cst_18 : f32 to vector<8x128xf32>
    %71 = arith.maximumf %69, %70 : vector<8x128xf32>
    %c5_19 = arith.constant 5 : index
    %72 = memref.load %arg4[%c5_19] : memref<64xf32, #tpu.memory_space<smem>>
    %73 = vector.broadcast %72 : f32 to vector<8x128xf32>
    %74 = arith.mulf %71, %73 : vector<8x128xf32>
    %75 = arith.addf %63, %74 : vector<8x128xf32>
    %c6 = arith.constant 6 : index
    %76 = memref.load %arg2[%c6] : memref<64xf32, #tpu.memory_space<smem>>
    %77 = vector.broadcast %76 : f32 to vector<8x128xf32>
    %78 = arith.mulf %2, %77 : vector<8x128xf32>
    %c6_20 = arith.constant 6 : index
    %79 = memref.load %arg3[%c6_20] : memref<64xf32, #tpu.memory_space<smem>>
    %80 = vector.broadcast %79 : f32 to vector<8x128xf32>
    %81 = arith.addf %78, %80 : vector<8x128xf32>
    %cst_21 = arith.constant 0.000000e+00 : f32
    %82 = vector.broadcast %cst_21 : f32 to vector<8x128xf32>
    %83 = arith.maximumf %81, %82 : vector<8x128xf32>
    %c6_22 = arith.constant 6 : index
    %84 = memref.load %arg4[%c6_22] : memref<64xf32, #tpu.memory_space<smem>>
    %85 = vector.broadcast %84 : f32 to vector<8x128xf32>
    %86 = arith.mulf %83, %85 : vector<8x128xf32>
    %87 = arith.addf %75, %86 : vector<8x128xf32>
    %c7 = arith.constant 7 : index
    %88 = memref.load %arg2[%c7] : memref<64xf32, #tpu.memory_space<smem>>
    %89 = vector.broadcast %88 : f32 to vector<8x128xf32>
    %90 = arith.mulf %2, %89 : vector<8x128xf32>
    %c7_23 = arith.constant 7 : index
    %91 = memref.load %arg3[%c7_23] : memref<64xf32, #tpu.memory_space<smem>>
    %92 = vector.broadcast %91 : f32 to vector<8x128xf32>
    %93 = arith.addf %90, %92 : vector<8x128xf32>
    %cst_24 = arith.constant 0.000000e+00 : f32
    %94 = vector.broadcast %cst_24 : f32 to vector<8x128xf32>
    %95 = arith.maximumf %93, %94 : vector<8x128xf32>
    %c7_25 = arith.constant 7 : index
    %96 = memref.load %arg4[%c7_25] : memref<64xf32, #tpu.memory_space<smem>>
    %97 = vector.broadcast %96 : f32 to vector<8x128xf32>
    %98 = arith.mulf %95, %97 : vector<8x128xf32>
    %99 = arith.addf %87, %98 : vector<8x128xf32>
    %c8 = arith.constant 8 : index
    %100 = memref.load %arg2[%c8] : memref<64xf32, #tpu.memory_space<smem>>
    %101 = vector.broadcast %100 : f32 to vector<8x128xf32>
    %102 = arith.mulf %2, %101 : vector<8x128xf32>
    %c8_26 = arith.constant 8 : index
    %103 = memref.load %arg3[%c8_26] : memref<64xf32, #tpu.memory_space<smem>>
    %104 = vector.broadcast %103 : f32 to vector<8x128xf32>
    %105 = arith.addf %102, %104 : vector<8x128xf32>
    %cst_27 = arith.constant 0.000000e+00 : f32
    %106 = vector.broadcast %cst_27 : f32 to vector<8x128xf32>
    %107 = arith.maximumf %105, %106 : vector<8x128xf32>
    %c8_28 = arith.constant 8 : index
    %108 = memref.load %arg4[%c8_28] : memref<64xf32, #tpu.memory_space<smem>>
    %109 = vector.broadcast %108 : f32 to vector<8x128xf32>
    %110 = arith.mulf %107, %109 : vector<8x128xf32>
    %111 = arith.addf %99, %110 : vector<8x128xf32>
    %c9 = arith.constant 9 : index
    %112 = memref.load %arg2[%c9] : memref<64xf32, #tpu.memory_space<smem>>
    %113 = vector.broadcast %112 : f32 to vector<8x128xf32>
    %114 = arith.mulf %2, %113 : vector<8x128xf32>
    %c9_29 = arith.constant 9 : index
    %115 = memref.load %arg3[%c9_29] : memref<64xf32, #tpu.memory_space<smem>>
    %116 = vector.broadcast %115 : f32 to vector<8x128xf32>
    %117 = arith.addf %114, %116 : vector<8x128xf32>
    %cst_30 = arith.constant 0.000000e+00 : f32
    %118 = vector.broadcast %cst_30 : f32 to vector<8x128xf32>
    %119 = arith.maximumf %117, %118 : vector<8x128xf32>
    %c9_31 = arith.constant 9 : index
    %120 = memref.load %arg4[%c9_31] : memref<64xf32, #tpu.memory_space<smem>>
    %121 = vector.broadcast %120 : f32 to vector<8x128xf32>
    %122 = arith.mulf %119, %121 : vector<8x128xf32>
    %123 = arith.addf %111, %122 : vector<8x128xf32>
    %c10 = arith.constant 10 : index
    %124 = memref.load %arg2[%c10] : memref<64xf32, #tpu.memory_space<smem>>
    %125 = vector.broadcast %124 : f32 to vector<8x128xf32>
    %126 = arith.mulf %2, %125 : vector<8x128xf32>
    %c10_32 = arith.constant 10 : index
    %127 = memref.load %arg3[%c10_32] : memref<64xf32, #tpu.memory_space<smem>>
    %128 = vector.broadcast %127 : f32 to vector<8x128xf32>
    %129 = arith.addf %126, %128 : vector<8x128xf32>
    %cst_33 = arith.constant 0.000000e+00 : f32
    %130 = vector.broadcast %cst_33 : f32 to vector<8x128xf32>
    %131 = arith.maximumf %129, %130 : vector<8x128xf32>
    %c10_34 = arith.constant 10 : index
    %132 = memref.load %arg4[%c10_34] : memref<64xf32, #tpu.memory_space<smem>>
    %133 = vector.broadcast %132 : f32 to vector<8x128xf32>
    %134 = arith.mulf %131, %133 : vector<8x128xf32>
    %135 = arith.addf %123, %134 : vector<8x128xf32>
    %c11 = arith.constant 11 : index
    %136 = memref.load %arg2[%c11] : memref<64xf32, #tpu.memory_space<smem>>
    %137 = vector.broadcast %136 : f32 to vector<8x128xf32>
    %138 = arith.mulf %2, %137 : vector<8x128xf32>
    %c11_35 = arith.constant 11 : index
    %139 = memref.load %arg3[%c11_35] : memref<64xf32, #tpu.memory_space<smem>>
    %140 = vector.broadcast %139 : f32 to vector<8x128xf32>
    %141 = arith.addf %138, %140 : vector<8x128xf32>
    %cst_36 = arith.constant 0.000000e+00 : f32
    %142 = vector.broadcast %cst_36 : f32 to vector<8x128xf32>
    %143 = arith.maximumf %141, %142 : vector<8x128xf32>
    %c11_37 = arith.constant 11 : index
    %144 = memref.load %arg4[%c11_37] : memref<64xf32, #tpu.memory_space<smem>>
    %145 = vector.broadcast %144 : f32 to vector<8x128xf32>
    %146 = arith.mulf %143, %145 : vector<8x128xf32>
    %147 = arith.addf %135, %146 : vector<8x128xf32>
    %c12 = arith.constant 12 : index
    %148 = memref.load %arg2[%c12] : memref<64xf32, #tpu.memory_space<smem>>
    %149 = vector.broadcast %148 : f32 to vector<8x128xf32>
    %150 = arith.mulf %2, %149 : vector<8x128xf32>
    %c12_38 = arith.constant 12 : index
    %151 = memref.load %arg3[%c12_38] : memref<64xf32, #tpu.memory_space<smem>>
    %152 = vector.broadcast %151 : f32 to vector<8x128xf32>
    %153 = arith.addf %150, %152 : vector<8x128xf32>
    %cst_39 = arith.constant 0.000000e+00 : f32
    %154 = vector.broadcast %cst_39 : f32 to vector<8x128xf32>
    %155 = arith.maximumf %153, %154 : vector<8x128xf32>
    %c12_40 = arith.constant 12 : index
    %156 = memref.load %arg4[%c12_40] : memref<64xf32, #tpu.memory_space<smem>>
    %157 = vector.broadcast %156 : f32 to vector<8x128xf32>
    %158 = arith.mulf %155, %157 : vector<8x128xf32>
    %159 = arith.addf %147, %158 : vector<8x128xf32>
    %c13 = arith.constant 13 : index
    %160 = memref.load %arg2[%c13] : memref<64xf32, #tpu.memory_space<smem>>
    %161 = vector.broadcast %160 : f32 to vector<8x128xf32>
    %162 = arith.mulf %2, %161 : vector<8x128xf32>
    %c13_41 = arith.constant 13 : index
    %163 = memref.load %arg3[%c13_41] : memref<64xf32, #tpu.memory_space<smem>>
    %164 = vector.broadcast %163 : f32 to vector<8x128xf32>
    %165 = arith.addf %162, %164 : vector<8x128xf32>
    %cst_42 = arith.constant 0.000000e+00 : f32
    %166 = vector.broadcast %cst_42 : f32 to vector<8x128xf32>
    %167 = arith.maximumf %165, %166 : vector<8x128xf32>
    %c13_43 = arith.constant 13 : index
    %168 = memref.load %arg4[%c13_43] : memref<64xf32, #tpu.memory_space<smem>>
    %169 = vector.broadcast %168 : f32 to vector<8x128xf32>
    %170 = arith.mulf %167, %169 : vector<8x128xf32>
    %171 = arith.addf %159, %170 : vector<8x128xf32>
    %c14 = arith.constant 14 : index
    %172 = memref.load %arg2[%c14] : memref<64xf32, #tpu.memory_space<smem>>
    %173 = vector.broadcast %172 : f32 to vector<8x128xf32>
    %174 = arith.mulf %2, %173 : vector<8x128xf32>
    %c14_44 = arith.constant 14 : index
    %175 = memref.load %arg3[%c14_44] : memref<64xf32, #tpu.memory_space<smem>>
    %176 = vector.broadcast %175 : f32 to vector<8x128xf32>
    %177 = arith.addf %174, %176 : vector<8x128xf32>
    %cst_45 = arith.constant 0.000000e+00 : f32
    %178 = vector.broadcast %cst_45 : f32 to vector<8x128xf32>
    %179 = arith.maximumf %177, %178 : vector<8x128xf32>
    %c14_46 = arith.constant 14 : index
    %180 = memref.load %arg4[%c14_46] : memref<64xf32, #tpu.memory_space<smem>>
    %181 = vector.broadcast %180 : f32 to vector<8x128xf32>
    %182 = arith.mulf %179, %181 : vector<8x128xf32>
    %183 = arith.addf %171, %182 : vector<8x128xf32>
    %c15 = arith.constant 15 : index
    %184 = memref.load %arg2[%c15] : memref<64xf32, #tpu.memory_space<smem>>
    %185 = vector.broadcast %184 : f32 to vector<8x128xf32>
    %186 = arith.mulf %2, %185 : vector<8x128xf32>
    %c15_47 = arith.constant 15 : index
    %187 = memref.load %arg3[%c15_47] : memref<64xf32, #tpu.memory_space<smem>>
    %188 = vector.broadcast %187 : f32 to vector<8x128xf32>
    %189 = arith.addf %186, %188 : vector<8x128xf32>
    %cst_48 = arith.constant 0.000000e+00 : f32
    %190 = vector.broadcast %cst_48 : f32 to vector<8x128xf32>
    %191 = arith.maximumf %189, %190 : vector<8x128xf32>
    %c15_49 = arith.constant 15 : index
    %192 = memref.load %arg4[%c15_49] : memref<64xf32, #tpu.memory_space<smem>>
    %193 = vector.broadcast %192 : f32 to vector<8x128xf32>
    %194 = arith.mulf %191, %193 : vector<8x128xf32>
    %195 = arith.addf %183, %194 : vector<8x128xf32>
    %c16 = arith.constant 16 : index
    %196 = memref.load %arg2[%c16] : memref<64xf32, #tpu.memory_space<smem>>
    %197 = vector.broadcast %196 : f32 to vector<8x128xf32>
    %198 = arith.mulf %2, %197 : vector<8x128xf32>
    %c16_50 = arith.constant 16 : index
    %199 = memref.load %arg3[%c16_50] : memref<64xf32, #tpu.memory_space<smem>>
    %200 = vector.broadcast %199 : f32 to vector<8x128xf32>
    %201 = arith.addf %198, %200 : vector<8x128xf32>
    %cst_51 = arith.constant 0.000000e+00 : f32
    %202 = vector.broadcast %cst_51 : f32 to vector<8x128xf32>
    %203 = arith.maximumf %201, %202 : vector<8x128xf32>
    %c16_52 = arith.constant 16 : index
    %204 = memref.load %arg4[%c16_52] : memref<64xf32, #tpu.memory_space<smem>>
    %205 = vector.broadcast %204 : f32 to vector<8x128xf32>
    %206 = arith.mulf %203, %205 : vector<8x128xf32>
    %207 = arith.addf %195, %206 : vector<8x128xf32>
    %c17 = arith.constant 17 : index
    %208 = memref.load %arg2[%c17] : memref<64xf32, #tpu.memory_space<smem>>
    %209 = vector.broadcast %208 : f32 to vector<8x128xf32>
    %210 = arith.mulf %2, %209 : vector<8x128xf32>
    %c17_53 = arith.constant 17 : index
    %211 = memref.load %arg3[%c17_53] : memref<64xf32, #tpu.memory_space<smem>>
    %212 = vector.broadcast %211 : f32 to vector<8x128xf32>
    %213 = arith.addf %210, %212 : vector<8x128xf32>
    %cst_54 = arith.constant 0.000000e+00 : f32
    %214 = vector.broadcast %cst_54 : f32 to vector<8x128xf32>
    %215 = arith.maximumf %213, %214 : vector<8x128xf32>
    %c17_55 = arith.constant 17 : index
    %216 = memref.load %arg4[%c17_55] : memref<64xf32, #tpu.memory_space<smem>>
    %217 = vector.broadcast %216 : f32 to vector<8x128xf32>
    %218 = arith.mulf %215, %217 : vector<8x128xf32>
    %219 = arith.addf %207, %218 : vector<8x128xf32>
    %c18 = arith.constant 18 : index
    %220 = memref.load %arg2[%c18] : memref<64xf32, #tpu.memory_space<smem>>
    %221 = vector.broadcast %220 : f32 to vector<8x128xf32>
    %222 = arith.mulf %2, %221 : vector<8x128xf32>
    %c18_56 = arith.constant 18 : index
    %223 = memref.load %arg3[%c18_56] : memref<64xf32, #tpu.memory_space<smem>>
    %224 = vector.broadcast %223 : f32 to vector<8x128xf32>
    %225 = arith.addf %222, %224 : vector<8x128xf32>
    %cst_57 = arith.constant 0.000000e+00 : f32
    %226 = vector.broadcast %cst_57 : f32 to vector<8x128xf32>
    %227 = arith.maximumf %225, %226 : vector<8x128xf32>
    %c18_58 = arith.constant 18 : index
    %228 = memref.load %arg4[%c18_58] : memref<64xf32, #tpu.memory_space<smem>>
    %229 = vector.broadcast %228 : f32 to vector<8x128xf32>
    %230 = arith.mulf %227, %229 : vector<8x128xf32>
    %231 = arith.addf %219, %230 : vector<8x128xf32>
    %c19 = arith.constant 19 : index
    %232 = memref.load %arg2[%c19] : memref<64xf32, #tpu.memory_space<smem>>
    %233 = vector.broadcast %232 : f32 to vector<8x128xf32>
    %234 = arith.mulf %2, %233 : vector<8x128xf32>
    %c19_59 = arith.constant 19 : index
    %235 = memref.load %arg3[%c19_59] : memref<64xf32, #tpu.memory_space<smem>>
    %236 = vector.broadcast %235 : f32 to vector<8x128xf32>
    %237 = arith.addf %234, %236 : vector<8x128xf32>
    %cst_60 = arith.constant 0.000000e+00 : f32
    %238 = vector.broadcast %cst_60 : f32 to vector<8x128xf32>
    %239 = arith.maximumf %237, %238 : vector<8x128xf32>
    %c19_61 = arith.constant 19 : index
    %240 = memref.load %arg4[%c19_61] : memref<64xf32, #tpu.memory_space<smem>>
    %241 = vector.broadcast %240 : f32 to vector<8x128xf32>
    %242 = arith.mulf %239, %241 : vector<8x128xf32>
    %243 = arith.addf %231, %242 : vector<8x128xf32>
    %c20 = arith.constant 20 : index
    %244 = memref.load %arg2[%c20] : memref<64xf32, #tpu.memory_space<smem>>
    %245 = vector.broadcast %244 : f32 to vector<8x128xf32>
    %246 = arith.mulf %2, %245 : vector<8x128xf32>
    %c20_62 = arith.constant 20 : index
    %247 = memref.load %arg3[%c20_62] : memref<64xf32, #tpu.memory_space<smem>>
    %248 = vector.broadcast %247 : f32 to vector<8x128xf32>
    %249 = arith.addf %246, %248 : vector<8x128xf32>
    %cst_63 = arith.constant 0.000000e+00 : f32
    %250 = vector.broadcast %cst_63 : f32 to vector<8x128xf32>
    %251 = arith.maximumf %249, %250 : vector<8x128xf32>
    %c20_64 = arith.constant 20 : index
    %252 = memref.load %arg4[%c20_64] : memref<64xf32, #tpu.memory_space<smem>>
    %253 = vector.broadcast %252 : f32 to vector<8x128xf32>
    %254 = arith.mulf %251, %253 : vector<8x128xf32>
    %255 = arith.addf %243, %254 : vector<8x128xf32>
    %c21 = arith.constant 21 : index
    %256 = memref.load %arg2[%c21] : memref<64xf32, #tpu.memory_space<smem>>
    %257 = vector.broadcast %256 : f32 to vector<8x128xf32>
    %258 = arith.mulf %2, %257 : vector<8x128xf32>
    %c21_65 = arith.constant 21 : index
    %259 = memref.load %arg3[%c21_65] : memref<64xf32, #tpu.memory_space<smem>>
    %260 = vector.broadcast %259 : f32 to vector<8x128xf32>
    %261 = arith.addf %258, %260 : vector<8x128xf32>
    %cst_66 = arith.constant 0.000000e+00 : f32
    %262 = vector.broadcast %cst_66 : f32 to vector<8x128xf32>
    %263 = arith.maximumf %261, %262 : vector<8x128xf32>
    %c21_67 = arith.constant 21 : index
    %264 = memref.load %arg4[%c21_67] : memref<64xf32, #tpu.memory_space<smem>>
    %265 = vector.broadcast %264 : f32 to vector<8x128xf32>
    %266 = arith.mulf %263, %265 : vector<8x128xf32>
    %267 = arith.addf %255, %266 : vector<8x128xf32>
    %c22 = arith.constant 22 : index
    %268 = memref.load %arg2[%c22] : memref<64xf32, #tpu.memory_space<smem>>
    %269 = vector.broadcast %268 : f32 to vector<8x128xf32>
    %270 = arith.mulf %2, %269 : vector<8x128xf32>
    %c22_68 = arith.constant 22 : index
    %271 = memref.load %arg3[%c22_68] : memref<64xf32, #tpu.memory_space<smem>>
    %272 = vector.broadcast %271 : f32 to vector<8x128xf32>
    %273 = arith.addf %270, %272 : vector<8x128xf32>
    %cst_69 = arith.constant 0.000000e+00 : f32
    %274 = vector.broadcast %cst_69 : f32 to vector<8x128xf32>
    %275 = arith.maximumf %273, %274 : vector<8x128xf32>
    %c22_70 = arith.constant 22 : index
    %276 = memref.load %arg4[%c22_70] : memref<64xf32, #tpu.memory_space<smem>>
    %277 = vector.broadcast %276 : f32 to vector<8x128xf32>
    %278 = arith.mulf %275, %277 : vector<8x128xf32>
    %279 = arith.addf %267, %278 : vector<8x128xf32>
    %c23 = arith.constant 23 : index
    %280 = memref.load %arg2[%c23] : memref<64xf32, #tpu.memory_space<smem>>
    %281 = vector.broadcast %280 : f32 to vector<8x128xf32>
    %282 = arith.mulf %2, %281 : vector<8x128xf32>
    %c23_71 = arith.constant 23 : index
    %283 = memref.load %arg3[%c23_71] : memref<64xf32, #tpu.memory_space<smem>>
    %284 = vector.broadcast %283 : f32 to vector<8x128xf32>
    %285 = arith.addf %282, %284 : vector<8x128xf32>
    %cst_72 = arith.constant 0.000000e+00 : f32
    %286 = vector.broadcast %cst_72 : f32 to vector<8x128xf32>
    %287 = arith.maximumf %285, %286 : vector<8x128xf32>
    %c23_73 = arith.constant 23 : index
    %288 = memref.load %arg4[%c23_73] : memref<64xf32, #tpu.memory_space<smem>>
    %289 = vector.broadcast %288 : f32 to vector<8x128xf32>
    %290 = arith.mulf %287, %289 : vector<8x128xf32>
    %291 = arith.addf %279, %290 : vector<8x128xf32>
    %c24 = arith.constant 24 : index
    %292 = memref.load %arg2[%c24] : memref<64xf32, #tpu.memory_space<smem>>
    %293 = vector.broadcast %292 : f32 to vector<8x128xf32>
    %294 = arith.mulf %2, %293 : vector<8x128xf32>
    %c24_74 = arith.constant 24 : index
    %295 = memref.load %arg3[%c24_74] : memref<64xf32, #tpu.memory_space<smem>>
    %296 = vector.broadcast %295 : f32 to vector<8x128xf32>
    %297 = arith.addf %294, %296 : vector<8x128xf32>
    %cst_75 = arith.constant 0.000000e+00 : f32
    %298 = vector.broadcast %cst_75 : f32 to vector<8x128xf32>
    %299 = arith.maximumf %297, %298 : vector<8x128xf32>
    %c24_76 = arith.constant 24 : index
    %300 = memref.load %arg4[%c24_76] : memref<64xf32, #tpu.memory_space<smem>>
    %301 = vector.broadcast %300 : f32 to vector<8x128xf32>
    %302 = arith.mulf %299, %301 : vector<8x128xf32>
    %303 = arith.addf %291, %302 : vector<8x128xf32>
    %c25 = arith.constant 25 : index
    %304 = memref.load %arg2[%c25] : memref<64xf32, #tpu.memory_space<smem>>
    %305 = vector.broadcast %304 : f32 to vector<8x128xf32>
    %306 = arith.mulf %2, %305 : vector<8x128xf32>
    %c25_77 = arith.constant 25 : index
    %307 = memref.load %arg3[%c25_77] : memref<64xf32, #tpu.memory_space<smem>>
    %308 = vector.broadcast %307 : f32 to vector<8x128xf32>
    %309 = arith.addf %306, %308 : vector<8x128xf32>
    %cst_78 = arith.constant 0.000000e+00 : f32
    %310 = vector.broadcast %cst_78 : f32 to vector<8x128xf32>
    %311 = arith.maximumf %309, %310 : vector<8x128xf32>
    %c25_79 = arith.constant 25 : index
    %312 = memref.load %arg4[%c25_79] : memref<64xf32, #tpu.memory_space<smem>>
    %313 = vector.broadcast %312 : f32 to vector<8x128xf32>
    %314 = arith.mulf %311, %313 : vector<8x128xf32>
    %315 = arith.addf %303, %314 : vector<8x128xf32>
    %c26 = arith.constant 26 : index
    %316 = memref.load %arg2[%c26] : memref<64xf32, #tpu.memory_space<smem>>
    %317 = vector.broadcast %316 : f32 to vector<8x128xf32>
    %318 = arith.mulf %2, %317 : vector<8x128xf32>
    %c26_80 = arith.constant 26 : index
    %319 = memref.load %arg3[%c26_80] : memref<64xf32, #tpu.memory_space<smem>>
    %320 = vector.broadcast %319 : f32 to vector<8x128xf32>
    %321 = arith.addf %318, %320 : vector<8x128xf32>
    %cst_81 = arith.constant 0.000000e+00 : f32
    %322 = vector.broadcast %cst_81 : f32 to vector<8x128xf32>
    %323 = arith.maximumf %321, %322 : vector<8x128xf32>
    %c26_82 = arith.constant 26 : index
    %324 = memref.load %arg4[%c26_82] : memref<64xf32, #tpu.memory_space<smem>>
    %325 = vector.broadcast %324 : f32 to vector<8x128xf32>
    %326 = arith.mulf %323, %325 : vector<8x128xf32>
    %327 = arith.addf %315, %326 : vector<8x128xf32>
    %c27 = arith.constant 27 : index
    %328 = memref.load %arg2[%c27] : memref<64xf32, #tpu.memory_space<smem>>
    %329 = vector.broadcast %328 : f32 to vector<8x128xf32>
    %330 = arith.mulf %2, %329 : vector<8x128xf32>
    %c27_83 = arith.constant 27 : index
    %331 = memref.load %arg3[%c27_83] : memref<64xf32, #tpu.memory_space<smem>>
    %332 = vector.broadcast %331 : f32 to vector<8x128xf32>
    %333 = arith.addf %330, %332 : vector<8x128xf32>
    %cst_84 = arith.constant 0.000000e+00 : f32
    %334 = vector.broadcast %cst_84 : f32 to vector<8x128xf32>
    %335 = arith.maximumf %333, %334 : vector<8x128xf32>
    %c27_85 = arith.constant 27 : index
    %336 = memref.load %arg4[%c27_85] : memref<64xf32, #tpu.memory_space<smem>>
    %337 = vector.broadcast %336 : f32 to vector<8x128xf32>
    %338 = arith.mulf %335, %337 : vector<8x128xf32>
    %339 = arith.addf %327, %338 : vector<8x128xf32>
    %c28 = arith.constant 28 : index
    %340 = memref.load %arg2[%c28] : memref<64xf32, #tpu.memory_space<smem>>
    %341 = vector.broadcast %340 : f32 to vector<8x128xf32>
    %342 = arith.mulf %2, %341 : vector<8x128xf32>
    %c28_86 = arith.constant 28 : index
    %343 = memref.load %arg3[%c28_86] : memref<64xf32, #tpu.memory_space<smem>>
    %344 = vector.broadcast %343 : f32 to vector<8x128xf32>
    %345 = arith.addf %342, %344 : vector<8x128xf32>
    %cst_87 = arith.constant 0.000000e+00 : f32
    %346 = vector.broadcast %cst_87 : f32 to vector<8x128xf32>
    %347 = arith.maximumf %345, %346 : vector<8x128xf32>
    %c28_88 = arith.constant 28 : index
    %348 = memref.load %arg4[%c28_88] : memref<64xf32, #tpu.memory_space<smem>>
    %349 = vector.broadcast %348 : f32 to vector<8x128xf32>
    %350 = arith.mulf %347, %349 : vector<8x128xf32>
    %351 = arith.addf %339, %350 : vector<8x128xf32>
    %c29 = arith.constant 29 : index
    %352 = memref.load %arg2[%c29] : memref<64xf32, #tpu.memory_space<smem>>
    %353 = vector.broadcast %352 : f32 to vector<8x128xf32>
    %354 = arith.mulf %2, %353 : vector<8x128xf32>
    %c29_89 = arith.constant 29 : index
    %355 = memref.load %arg3[%c29_89] : memref<64xf32, #tpu.memory_space<smem>>
    %356 = vector.broadcast %355 : f32 to vector<8x128xf32>
    %357 = arith.addf %354, %356 : vector<8x128xf32>
    %cst_90 = arith.constant 0.000000e+00 : f32
    %358 = vector.broadcast %cst_90 : f32 to vector<8x128xf32>
    %359 = arith.maximumf %357, %358 : vector<8x128xf32>
    %c29_91 = arith.constant 29 : index
    %360 = memref.load %arg4[%c29_91] : memref<64xf32, #tpu.memory_space<smem>>
    %361 = vector.broadcast %360 : f32 to vector<8x128xf32>
    %362 = arith.mulf %359, %361 : vector<8x128xf32>
    %363 = arith.addf %351, %362 : vector<8x128xf32>
    %c30 = arith.constant 30 : index
    %364 = memref.load %arg2[%c30] : memref<64xf32, #tpu.memory_space<smem>>
    %365 = vector.broadcast %364 : f32 to vector<8x128xf32>
    %366 = arith.mulf %2, %365 : vector<8x128xf32>
    %c30_92 = arith.constant 30 : index
    %367 = memref.load %arg3[%c30_92] : memref<64xf32, #tpu.memory_space<smem>>
    %368 = vector.broadcast %367 : f32 to vector<8x128xf32>
    %369 = arith.addf %366, %368 : vector<8x128xf32>
    %cst_93 = arith.constant 0.000000e+00 : f32
    %370 = vector.broadcast %cst_93 : f32 to vector<8x128xf32>
    %371 = arith.maximumf %369, %370 : vector<8x128xf32>
    %c30_94 = arith.constant 30 : index
    %372 = memref.load %arg4[%c30_94] : memref<64xf32, #tpu.memory_space<smem>>
    %373 = vector.broadcast %372 : f32 to vector<8x128xf32>
    %374 = arith.mulf %371, %373 : vector<8x128xf32>
    %375 = arith.addf %363, %374 : vector<8x128xf32>
    %c31 = arith.constant 31 : index
    %376 = memref.load %arg2[%c31] : memref<64xf32, #tpu.memory_space<smem>>
    %377 = vector.broadcast %376 : f32 to vector<8x128xf32>
    %378 = arith.mulf %2, %377 : vector<8x128xf32>
    %c31_95 = arith.constant 31 : index
    %379 = memref.load %arg3[%c31_95] : memref<64xf32, #tpu.memory_space<smem>>
    %380 = vector.broadcast %379 : f32 to vector<8x128xf32>
    %381 = arith.addf %378, %380 : vector<8x128xf32>
    %cst_96 = arith.constant 0.000000e+00 : f32
    %382 = vector.broadcast %cst_96 : f32 to vector<8x128xf32>
    %383 = arith.maximumf %381, %382 : vector<8x128xf32>
    %c31_97 = arith.constant 31 : index
    %384 = memref.load %arg4[%c31_97] : memref<64xf32, #tpu.memory_space<smem>>
    %385 = vector.broadcast %384 : f32 to vector<8x128xf32>
    %386 = arith.mulf %383, %385 : vector<8x128xf32>
    %387 = arith.addf %375, %386 : vector<8x128xf32>
    %c32 = arith.constant 32 : index
    %388 = memref.load %arg2[%c32] : memref<64xf32, #tpu.memory_space<smem>>
    %389 = vector.broadcast %388 : f32 to vector<8x128xf32>
    %390 = arith.mulf %2, %389 : vector<8x128xf32>
    %c32_98 = arith.constant 32 : index
    %391 = memref.load %arg3[%c32_98] : memref<64xf32, #tpu.memory_space<smem>>
    %392 = vector.broadcast %391 : f32 to vector<8x128xf32>
    %393 = arith.addf %390, %392 : vector<8x128xf32>
    %cst_99 = arith.constant 0.000000e+00 : f32
    %394 = vector.broadcast %cst_99 : f32 to vector<8x128xf32>
    %395 = arith.maximumf %393, %394 : vector<8x128xf32>
    %c32_100 = arith.constant 32 : index
    %396 = memref.load %arg4[%c32_100] : memref<64xf32, #tpu.memory_space<smem>>
    %397 = vector.broadcast %396 : f32 to vector<8x128xf32>
    %398 = arith.mulf %395, %397 : vector<8x128xf32>
    %399 = arith.addf %387, %398 : vector<8x128xf32>
    %c33 = arith.constant 33 : index
    %400 = memref.load %arg2[%c33] : memref<64xf32, #tpu.memory_space<smem>>
    %401 = vector.broadcast %400 : f32 to vector<8x128xf32>
    %402 = arith.mulf %2, %401 : vector<8x128xf32>
    %c33_101 = arith.constant 33 : index
    %403 = memref.load %arg3[%c33_101] : memref<64xf32, #tpu.memory_space<smem>>
    %404 = vector.broadcast %403 : f32 to vector<8x128xf32>
    %405 = arith.addf %402, %404 : vector<8x128xf32>
    %cst_102 = arith.constant 0.000000e+00 : f32
    %406 = vector.broadcast %cst_102 : f32 to vector<8x128xf32>
    %407 = arith.maximumf %405, %406 : vector<8x128xf32>
    %c33_103 = arith.constant 33 : index
    %408 = memref.load %arg4[%c33_103] : memref<64xf32, #tpu.memory_space<smem>>
    %409 = vector.broadcast %408 : f32 to vector<8x128xf32>
    %410 = arith.mulf %407, %409 : vector<8x128xf32>
    %411 = arith.addf %399, %410 : vector<8x128xf32>
    %c34 = arith.constant 34 : index
    %412 = memref.load %arg2[%c34] : memref<64xf32, #tpu.memory_space<smem>>
    %413 = vector.broadcast %412 : f32 to vector<8x128xf32>
    %414 = arith.mulf %2, %413 : vector<8x128xf32>
    %c34_104 = arith.constant 34 : index
    %415 = memref.load %arg3[%c34_104] : memref<64xf32, #tpu.memory_space<smem>>
    %416 = vector.broadcast %415 : f32 to vector<8x128xf32>
    %417 = arith.addf %414, %416 : vector<8x128xf32>
    %cst_105 = arith.constant 0.000000e+00 : f32
    %418 = vector.broadcast %cst_105 : f32 to vector<8x128xf32>
    %419 = arith.maximumf %417, %418 : vector<8x128xf32>
    %c34_106 = arith.constant 34 : index
    %420 = memref.load %arg4[%c34_106] : memref<64xf32, #tpu.memory_space<smem>>
    %421 = vector.broadcast %420 : f32 to vector<8x128xf32>
    %422 = arith.mulf %419, %421 : vector<8x128xf32>
    %423 = arith.addf %411, %422 : vector<8x128xf32>
    %c35 = arith.constant 35 : index
    %424 = memref.load %arg2[%c35] : memref<64xf32, #tpu.memory_space<smem>>
    %425 = vector.broadcast %424 : f32 to vector<8x128xf32>
    %426 = arith.mulf %2, %425 : vector<8x128xf32>
    %c35_107 = arith.constant 35 : index
    %427 = memref.load %arg3[%c35_107] : memref<64xf32, #tpu.memory_space<smem>>
    %428 = vector.broadcast %427 : f32 to vector<8x128xf32>
    %429 = arith.addf %426, %428 : vector<8x128xf32>
    %cst_108 = arith.constant 0.000000e+00 : f32
    %430 = vector.broadcast %cst_108 : f32 to vector<8x128xf32>
    %431 = arith.maximumf %429, %430 : vector<8x128xf32>
    %c35_109 = arith.constant 35 : index
    %432 = memref.load %arg4[%c35_109] : memref<64xf32, #tpu.memory_space<smem>>
    %433 = vector.broadcast %432 : f32 to vector<8x128xf32>
    %434 = arith.mulf %431, %433 : vector<8x128xf32>
    %435 = arith.addf %423, %434 : vector<8x128xf32>
    %c36 = arith.constant 36 : index
    %436 = memref.load %arg2[%c36] : memref<64xf32, #tpu.memory_space<smem>>
    %437 = vector.broadcast %436 : f32 to vector<8x128xf32>
    %438 = arith.mulf %2, %437 : vector<8x128xf32>
    %c36_110 = arith.constant 36 : index
    %439 = memref.load %arg3[%c36_110] : memref<64xf32, #tpu.memory_space<smem>>
    %440 = vector.broadcast %439 : f32 to vector<8x128xf32>
    %441 = arith.addf %438, %440 : vector<8x128xf32>
    %cst_111 = arith.constant 0.000000e+00 : f32
    %442 = vector.broadcast %cst_111 : f32 to vector<8x128xf32>
    %443 = arith.maximumf %441, %442 : vector<8x128xf32>
    %c36_112 = arith.constant 36 : index
    %444 = memref.load %arg4[%c36_112] : memref<64xf32, #tpu.memory_space<smem>>
    %445 = vector.broadcast %444 : f32 to vector<8x128xf32>
    %446 = arith.mulf %443, %445 : vector<8x128xf32>
    %447 = arith.addf %435, %446 : vector<8x128xf32>
    %c37 = arith.constant 37 : index
    %448 = memref.load %arg2[%c37] : memref<64xf32, #tpu.memory_space<smem>>
    %449 = vector.broadcast %448 : f32 to vector<8x128xf32>
    %450 = arith.mulf %2, %449 : vector<8x128xf32>
    %c37_113 = arith.constant 37 : index
    %451 = memref.load %arg3[%c37_113] : memref<64xf32, #tpu.memory_space<smem>>
    %452 = vector.broadcast %451 : f32 to vector<8x128xf32>
    %453 = arith.addf %450, %452 : vector<8x128xf32>
    %cst_114 = arith.constant 0.000000e+00 : f32
    %454 = vector.broadcast %cst_114 : f32 to vector<8x128xf32>
    %455 = arith.maximumf %453, %454 : vector<8x128xf32>
    %c37_115 = arith.constant 37 : index
    %456 = memref.load %arg4[%c37_115] : memref<64xf32, #tpu.memory_space<smem>>
    %457 = vector.broadcast %456 : f32 to vector<8x128xf32>
    %458 = arith.mulf %455, %457 : vector<8x128xf32>
    %459 = arith.addf %447, %458 : vector<8x128xf32>
    %c38 = arith.constant 38 : index
    %460 = memref.load %arg2[%c38] : memref<64xf32, #tpu.memory_space<smem>>
    %461 = vector.broadcast %460 : f32 to vector<8x128xf32>
    %462 = arith.mulf %2, %461 : vector<8x128xf32>
    %c38_116 = arith.constant 38 : index
    %463 = memref.load %arg3[%c38_116] : memref<64xf32, #tpu.memory_space<smem>>
    %464 = vector.broadcast %463 : f32 to vector<8x128xf32>
    %465 = arith.addf %462, %464 : vector<8x128xf32>
    %cst_117 = arith.constant 0.000000e+00 : f32
    %466 = vector.broadcast %cst_117 : f32 to vector<8x128xf32>
    %467 = arith.maximumf %465, %466 : vector<8x128xf32>
    %c38_118 = arith.constant 38 : index
    %468 = memref.load %arg4[%c38_118] : memref<64xf32, #tpu.memory_space<smem>>
    %469 = vector.broadcast %468 : f32 to vector<8x128xf32>
    %470 = arith.mulf %467, %469 : vector<8x128xf32>
    %471 = arith.addf %459, %470 : vector<8x128xf32>
    %c39 = arith.constant 39 : index
    %472 = memref.load %arg2[%c39] : memref<64xf32, #tpu.memory_space<smem>>
    %473 = vector.broadcast %472 : f32 to vector<8x128xf32>
    %474 = arith.mulf %2, %473 : vector<8x128xf32>
    %c39_119 = arith.constant 39 : index
    %475 = memref.load %arg3[%c39_119] : memref<64xf32, #tpu.memory_space<smem>>
    %476 = vector.broadcast %475 : f32 to vector<8x128xf32>
    %477 = arith.addf %474, %476 : vector<8x128xf32>
    %cst_120 = arith.constant 0.000000e+00 : f32
    %478 = vector.broadcast %cst_120 : f32 to vector<8x128xf32>
    %479 = arith.maximumf %477, %478 : vector<8x128xf32>
    %c39_121 = arith.constant 39 : index
    %480 = memref.load %arg4[%c39_121] : memref<64xf32, #tpu.memory_space<smem>>
    %481 = vector.broadcast %480 : f32 to vector<8x128xf32>
    %482 = arith.mulf %479, %481 : vector<8x128xf32>
    %483 = arith.addf %471, %482 : vector<8x128xf32>
    %c40 = arith.constant 40 : index
    %484 = memref.load %arg2[%c40] : memref<64xf32, #tpu.memory_space<smem>>
    %485 = vector.broadcast %484 : f32 to vector<8x128xf32>
    %486 = arith.mulf %2, %485 : vector<8x128xf32>
    %c40_122 = arith.constant 40 : index
    %487 = memref.load %arg3[%c40_122] : memref<64xf32, #tpu.memory_space<smem>>
    %488 = vector.broadcast %487 : f32 to vector<8x128xf32>
    %489 = arith.addf %486, %488 : vector<8x128xf32>
    %cst_123 = arith.constant 0.000000e+00 : f32
    %490 = vector.broadcast %cst_123 : f32 to vector<8x128xf32>
    %491 = arith.maximumf %489, %490 : vector<8x128xf32>
    %c40_124 = arith.constant 40 : index
    %492 = memref.load %arg4[%c40_124] : memref<64xf32, #tpu.memory_space<smem>>
    %493 = vector.broadcast %492 : f32 to vector<8x128xf32>
    %494 = arith.mulf %491, %493 : vector<8x128xf32>
    %495 = arith.addf %483, %494 : vector<8x128xf32>
    %c41 = arith.constant 41 : index
    %496 = memref.load %arg2[%c41] : memref<64xf32, #tpu.memory_space<smem>>
    %497 = vector.broadcast %496 : f32 to vector<8x128xf32>
    %498 = arith.mulf %2, %497 : vector<8x128xf32>
    %c41_125 = arith.constant 41 : index
    %499 = memref.load %arg3[%c41_125] : memref<64xf32, #tpu.memory_space<smem>>
    %500 = vector.broadcast %499 : f32 to vector<8x128xf32>
    %501 = arith.addf %498, %500 : vector<8x128xf32>
    %cst_126 = arith.constant 0.000000e+00 : f32
    %502 = vector.broadcast %cst_126 : f32 to vector<8x128xf32>
    %503 = arith.maximumf %501, %502 : vector<8x128xf32>
    %c41_127 = arith.constant 41 : index
    %504 = memref.load %arg4[%c41_127] : memref<64xf32, #tpu.memory_space<smem>>
    %505 = vector.broadcast %504 : f32 to vector<8x128xf32>
    %506 = arith.mulf %503, %505 : vector<8x128xf32>
    %507 = arith.addf %495, %506 : vector<8x128xf32>
    %c42 = arith.constant 42 : index
    %508 = memref.load %arg2[%c42] : memref<64xf32, #tpu.memory_space<smem>>
    %509 = vector.broadcast %508 : f32 to vector<8x128xf32>
    %510 = arith.mulf %2, %509 : vector<8x128xf32>
    %c42_128 = arith.constant 42 : index
    %511 = memref.load %arg3[%c42_128] : memref<64xf32, #tpu.memory_space<smem>>
    %512 = vector.broadcast %511 : f32 to vector<8x128xf32>
    %513 = arith.addf %510, %512 : vector<8x128xf32>
    %cst_129 = arith.constant 0.000000e+00 : f32
    %514 = vector.broadcast %cst_129 : f32 to vector<8x128xf32>
    %515 = arith.maximumf %513, %514 : vector<8x128xf32>
    %c42_130 = arith.constant 42 : index
    %516 = memref.load %arg4[%c42_130] : memref<64xf32, #tpu.memory_space<smem>>
    %517 = vector.broadcast %516 : f32 to vector<8x128xf32>
    %518 = arith.mulf %515, %517 : vector<8x128xf32>
    %519 = arith.addf %507, %518 : vector<8x128xf32>
    %c43 = arith.constant 43 : index
    %520 = memref.load %arg2[%c43] : memref<64xf32, #tpu.memory_space<smem>>
    %521 = vector.broadcast %520 : f32 to vector<8x128xf32>
    %522 = arith.mulf %2, %521 : vector<8x128xf32>
    %c43_131 = arith.constant 43 : index
    %523 = memref.load %arg3[%c43_131] : memref<64xf32, #tpu.memory_space<smem>>
    %524 = vector.broadcast %523 : f32 to vector<8x128xf32>
    %525 = arith.addf %522, %524 : vector<8x128xf32>
    %cst_132 = arith.constant 0.000000e+00 : f32
    %526 = vector.broadcast %cst_132 : f32 to vector<8x128xf32>
    %527 = arith.maximumf %525, %526 : vector<8x128xf32>
    %c43_133 = arith.constant 43 : index
    %528 = memref.load %arg4[%c43_133] : memref<64xf32, #tpu.memory_space<smem>>
    %529 = vector.broadcast %528 : f32 to vector<8x128xf32>
    %530 = arith.mulf %527, %529 : vector<8x128xf32>
    %531 = arith.addf %519, %530 : vector<8x128xf32>
    %c44 = arith.constant 44 : index
    %532 = memref.load %arg2[%c44] : memref<64xf32, #tpu.memory_space<smem>>
    %533 = vector.broadcast %532 : f32 to vector<8x128xf32>
    %534 = arith.mulf %2, %533 : vector<8x128xf32>
    %c44_134 = arith.constant 44 : index
    %535 = memref.load %arg3[%c44_134] : memref<64xf32, #tpu.memory_space<smem>>
    %536 = vector.broadcast %535 : f32 to vector<8x128xf32>
    %537 = arith.addf %534, %536 : vector<8x128xf32>
    %cst_135 = arith.constant 0.000000e+00 : f32
    %538 = vector.broadcast %cst_135 : f32 to vector<8x128xf32>
    %539 = arith.maximumf %537, %538 : vector<8x128xf32>
    %c44_136 = arith.constant 44 : index
    %540 = memref.load %arg4[%c44_136] : memref<64xf32, #tpu.memory_space<smem>>
    %541 = vector.broadcast %540 : f32 to vector<8x128xf32>
    %542 = arith.mulf %539, %541 : vector<8x128xf32>
    %543 = arith.addf %531, %542 : vector<8x128xf32>
    %c45 = arith.constant 45 : index
    %544 = memref.load %arg2[%c45] : memref<64xf32, #tpu.memory_space<smem>>
    %545 = vector.broadcast %544 : f32 to vector<8x128xf32>
    %546 = arith.mulf %2, %545 : vector<8x128xf32>
    %c45_137 = arith.constant 45 : index
    %547 = memref.load %arg3[%c45_137] : memref<64xf32, #tpu.memory_space<smem>>
    %548 = vector.broadcast %547 : f32 to vector<8x128xf32>
    %549 = arith.addf %546, %548 : vector<8x128xf32>
    %cst_138 = arith.constant 0.000000e+00 : f32
    %550 = vector.broadcast %cst_138 : f32 to vector<8x128xf32>
    %551 = arith.maximumf %549, %550 : vector<8x128xf32>
    %c45_139 = arith.constant 45 : index
    %552 = memref.load %arg4[%c45_139] : memref<64xf32, #tpu.memory_space<smem>>
    %553 = vector.broadcast %552 : f32 to vector<8x128xf32>
    %554 = arith.mulf %551, %553 : vector<8x128xf32>
    %555 = arith.addf %543, %554 : vector<8x128xf32>
    %c46 = arith.constant 46 : index
    %556 = memref.load %arg2[%c46] : memref<64xf32, #tpu.memory_space<smem>>
    %557 = vector.broadcast %556 : f32 to vector<8x128xf32>
    %558 = arith.mulf %2, %557 : vector<8x128xf32>
    %c46_140 = arith.constant 46 : index
    %559 = memref.load %arg3[%c46_140] : memref<64xf32, #tpu.memory_space<smem>>
    %560 = vector.broadcast %559 : f32 to vector<8x128xf32>
    %561 = arith.addf %558, %560 : vector<8x128xf32>
    %cst_141 = arith.constant 0.000000e+00 : f32
    %562 = vector.broadcast %cst_141 : f32 to vector<8x128xf32>
    %563 = arith.maximumf %561, %562 : vector<8x128xf32>
    %c46_142 = arith.constant 46 : index
    %564 = memref.load %arg4[%c46_142] : memref<64xf32, #tpu.memory_space<smem>>
    %565 = vector.broadcast %564 : f32 to vector<8x128xf32>
    %566 = arith.mulf %563, %565 : vector<8x128xf32>
    %567 = arith.addf %555, %566 : vector<8x128xf32>
    %c47 = arith.constant 47 : index
    %568 = memref.load %arg2[%c47] : memref<64xf32, #tpu.memory_space<smem>>
    %569 = vector.broadcast %568 : f32 to vector<8x128xf32>
    %570 = arith.mulf %2, %569 : vector<8x128xf32>
    %c47_143 = arith.constant 47 : index
    %571 = memref.load %arg3[%c47_143] : memref<64xf32, #tpu.memory_space<smem>>
    %572 = vector.broadcast %571 : f32 to vector<8x128xf32>
    %573 = arith.addf %570, %572 : vector<8x128xf32>
    %cst_144 = arith.constant 0.000000e+00 : f32
    %574 = vector.broadcast %cst_144 : f32 to vector<8x128xf32>
    %575 = arith.maximumf %573, %574 : vector<8x128xf32>
    %c47_145 = arith.constant 47 : index
    %576 = memref.load %arg4[%c47_145] : memref<64xf32, #tpu.memory_space<smem>>
    %577 = vector.broadcast %576 : f32 to vector<8x128xf32>
    %578 = arith.mulf %575, %577 : vector<8x128xf32>
    %579 = arith.addf %567, %578 : vector<8x128xf32>
    %c48 = arith.constant 48 : index
    %580 = memref.load %arg2[%c48] : memref<64xf32, #tpu.memory_space<smem>>
    %581 = vector.broadcast %580 : f32 to vector<8x128xf32>
    %582 = arith.mulf %2, %581 : vector<8x128xf32>
    %c48_146 = arith.constant 48 : index
    %583 = memref.load %arg3[%c48_146] : memref<64xf32, #tpu.memory_space<smem>>
    %584 = vector.broadcast %583 : f32 to vector<8x128xf32>
    %585 = arith.addf %582, %584 : vector<8x128xf32>
    %cst_147 = arith.constant 0.000000e+00 : f32
    %586 = vector.broadcast %cst_147 : f32 to vector<8x128xf32>
    %587 = arith.maximumf %585, %586 : vector<8x128xf32>
    %c48_148 = arith.constant 48 : index
    %588 = memref.load %arg4[%c48_148] : memref<64xf32, #tpu.memory_space<smem>>
    %589 = vector.broadcast %588 : f32 to vector<8x128xf32>
    %590 = arith.mulf %587, %589 : vector<8x128xf32>
    %591 = arith.addf %579, %590 : vector<8x128xf32>
    %c49 = arith.constant 49 : index
    %592 = memref.load %arg2[%c49] : memref<64xf32, #tpu.memory_space<smem>>
    %593 = vector.broadcast %592 : f32 to vector<8x128xf32>
    %594 = arith.mulf %2, %593 : vector<8x128xf32>
    %c49_149 = arith.constant 49 : index
    %595 = memref.load %arg3[%c49_149] : memref<64xf32, #tpu.memory_space<smem>>
    %596 = vector.broadcast %595 : f32 to vector<8x128xf32>
    %597 = arith.addf %594, %596 : vector<8x128xf32>
    %cst_150 = arith.constant 0.000000e+00 : f32
    %598 = vector.broadcast %cst_150 : f32 to vector<8x128xf32>
    %599 = arith.maximumf %597, %598 : vector<8x128xf32>
    %c49_151 = arith.constant 49 : index
    %600 = memref.load %arg4[%c49_151] : memref<64xf32, #tpu.memory_space<smem>>
    %601 = vector.broadcast %600 : f32 to vector<8x128xf32>
    %602 = arith.mulf %599, %601 : vector<8x128xf32>
    %603 = arith.addf %591, %602 : vector<8x128xf32>
    %c50 = arith.constant 50 : index
    %604 = memref.load %arg2[%c50] : memref<64xf32, #tpu.memory_space<smem>>
    %605 = vector.broadcast %604 : f32 to vector<8x128xf32>
    %606 = arith.mulf %2, %605 : vector<8x128xf32>
    %c50_152 = arith.constant 50 : index
    %607 = memref.load %arg3[%c50_152] : memref<64xf32, #tpu.memory_space<smem>>
    %608 = vector.broadcast %607 : f32 to vector<8x128xf32>
    %609 = arith.addf %606, %608 : vector<8x128xf32>
    %cst_153 = arith.constant 0.000000e+00 : f32
    %610 = vector.broadcast %cst_153 : f32 to vector<8x128xf32>
    %611 = arith.maximumf %609, %610 : vector<8x128xf32>
    %c50_154 = arith.constant 50 : index
    %612 = memref.load %arg4[%c50_154] : memref<64xf32, #tpu.memory_space<smem>>
    %613 = vector.broadcast %612 : f32 to vector<8x128xf32>
    %614 = arith.mulf %611, %613 : vector<8x128xf32>
    %615 = arith.addf %603, %614 : vector<8x128xf32>
    %c51 = arith.constant 51 : index
    %616 = memref.load %arg2[%c51] : memref<64xf32, #tpu.memory_space<smem>>
    %617 = vector.broadcast %616 : f32 to vector<8x128xf32>
    %618 = arith.mulf %2, %617 : vector<8x128xf32>
    %c51_155 = arith.constant 51 : index
    %619 = memref.load %arg3[%c51_155] : memref<64xf32, #tpu.memory_space<smem>>
    %620 = vector.broadcast %619 : f32 to vector<8x128xf32>
    %621 = arith.addf %618, %620 : vector<8x128xf32>
    %cst_156 = arith.constant 0.000000e+00 : f32
    %622 = vector.broadcast %cst_156 : f32 to vector<8x128xf32>
    %623 = arith.maximumf %621, %622 : vector<8x128xf32>
    %c51_157 = arith.constant 51 : index
    %624 = memref.load %arg4[%c51_157] : memref<64xf32, #tpu.memory_space<smem>>
    %625 = vector.broadcast %624 : f32 to vector<8x128xf32>
    %626 = arith.mulf %623, %625 : vector<8x128xf32>
    %627 = arith.addf %615, %626 : vector<8x128xf32>
    %c52 = arith.constant 52 : index
    %628 = memref.load %arg2[%c52] : memref<64xf32, #tpu.memory_space<smem>>
    %629 = vector.broadcast %628 : f32 to vector<8x128xf32>
    %630 = arith.mulf %2, %629 : vector<8x128xf32>
    %c52_158 = arith.constant 52 : index
    %631 = memref.load %arg3[%c52_158] : memref<64xf32, #tpu.memory_space<smem>>
    %632 = vector.broadcast %631 : f32 to vector<8x128xf32>
    %633 = arith.addf %630, %632 : vector<8x128xf32>
    %cst_159 = arith.constant 0.000000e+00 : f32
    %634 = vector.broadcast %cst_159 : f32 to vector<8x128xf32>
    %635 = arith.maximumf %633, %634 : vector<8x128xf32>
    %c52_160 = arith.constant 52 : index
    %636 = memref.load %arg4[%c52_160] : memref<64xf32, #tpu.memory_space<smem>>
    %637 = vector.broadcast %636 : f32 to vector<8x128xf32>
    %638 = arith.mulf %635, %637 : vector<8x128xf32>
    %639 = arith.addf %627, %638 : vector<8x128xf32>
    %c53 = arith.constant 53 : index
    %640 = memref.load %arg2[%c53] : memref<64xf32, #tpu.memory_space<smem>>
    %641 = vector.broadcast %640 : f32 to vector<8x128xf32>
    %642 = arith.mulf %2, %641 : vector<8x128xf32>
    %c53_161 = arith.constant 53 : index
    %643 = memref.load %arg3[%c53_161] : memref<64xf32, #tpu.memory_space<smem>>
    %644 = vector.broadcast %643 : f32 to vector<8x128xf32>
    %645 = arith.addf %642, %644 : vector<8x128xf32>
    %cst_162 = arith.constant 0.000000e+00 : f32
    %646 = vector.broadcast %cst_162 : f32 to vector<8x128xf32>
    %647 = arith.maximumf %645, %646 : vector<8x128xf32>
    %c53_163 = arith.constant 53 : index
    %648 = memref.load %arg4[%c53_163] : memref<64xf32, #tpu.memory_space<smem>>
    %649 = vector.broadcast %648 : f32 to vector<8x128xf32>
    %650 = arith.mulf %647, %649 : vector<8x128xf32>
    %651 = arith.addf %639, %650 : vector<8x128xf32>
    %c54 = arith.constant 54 : index
    %652 = memref.load %arg2[%c54] : memref<64xf32, #tpu.memory_space<smem>>
    %653 = vector.broadcast %652 : f32 to vector<8x128xf32>
    %654 = arith.mulf %2, %653 : vector<8x128xf32>
    %c54_164 = arith.constant 54 : index
    %655 = memref.load %arg3[%c54_164] : memref<64xf32, #tpu.memory_space<smem>>
    %656 = vector.broadcast %655 : f32 to vector<8x128xf32>
    %657 = arith.addf %654, %656 : vector<8x128xf32>
    %cst_165 = arith.constant 0.000000e+00 : f32
    %658 = vector.broadcast %cst_165 : f32 to vector<8x128xf32>
    %659 = arith.maximumf %657, %658 : vector<8x128xf32>
    %c54_166 = arith.constant 54 : index
    %660 = memref.load %arg4[%c54_166] : memref<64xf32, #tpu.memory_space<smem>>
    %661 = vector.broadcast %660 : f32 to vector<8x128xf32>
    %662 = arith.mulf %659, %661 : vector<8x128xf32>
    %663 = arith.addf %651, %662 : vector<8x128xf32>
    %c55 = arith.constant 55 : index
    %664 = memref.load %arg2[%c55] : memref<64xf32, #tpu.memory_space<smem>>
    %665 = vector.broadcast %664 : f32 to vector<8x128xf32>
    %666 = arith.mulf %2, %665 : vector<8x128xf32>
    %c55_167 = arith.constant 55 : index
    %667 = memref.load %arg3[%c55_167] : memref<64xf32, #tpu.memory_space<smem>>
    %668 = vector.broadcast %667 : f32 to vector<8x128xf32>
    %669 = arith.addf %666, %668 : vector<8x128xf32>
    %cst_168 = arith.constant 0.000000e+00 : f32
    %670 = vector.broadcast %cst_168 : f32 to vector<8x128xf32>
    %671 = arith.maximumf %669, %670 : vector<8x128xf32>
    %c55_169 = arith.constant 55 : index
    %672 = memref.load %arg4[%c55_169] : memref<64xf32, #tpu.memory_space<smem>>
    %673 = vector.broadcast %672 : f32 to vector<8x128xf32>
    %674 = arith.mulf %671, %673 : vector<8x128xf32>
    %675 = arith.addf %663, %674 : vector<8x128xf32>
    %c56 = arith.constant 56 : index
    %676 = memref.load %arg2[%c56] : memref<64xf32, #tpu.memory_space<smem>>
    %677 = vector.broadcast %676 : f32 to vector<8x128xf32>
    %678 = arith.mulf %2, %677 : vector<8x128xf32>
    %c56_170 = arith.constant 56 : index
    %679 = memref.load %arg3[%c56_170] : memref<64xf32, #tpu.memory_space<smem>>
    %680 = vector.broadcast %679 : f32 to vector<8x128xf32>
    %681 = arith.addf %678, %680 : vector<8x128xf32>
    %cst_171 = arith.constant 0.000000e+00 : f32
    %682 = vector.broadcast %cst_171 : f32 to vector<8x128xf32>
    %683 = arith.maximumf %681, %682 : vector<8x128xf32>
    %c56_172 = arith.constant 56 : index
    %684 = memref.load %arg4[%c56_172] : memref<64xf32, #tpu.memory_space<smem>>
    %685 = vector.broadcast %684 : f32 to vector<8x128xf32>
    %686 = arith.mulf %683, %685 : vector<8x128xf32>
    %687 = arith.addf %675, %686 : vector<8x128xf32>
    %c57 = arith.constant 57 : index
    %688 = memref.load %arg2[%c57] : memref<64xf32, #tpu.memory_space<smem>>
    %689 = vector.broadcast %688 : f32 to vector<8x128xf32>
    %690 = arith.mulf %2, %689 : vector<8x128xf32>
    %c57_173 = arith.constant 57 : index
    %691 = memref.load %arg3[%c57_173] : memref<64xf32, #tpu.memory_space<smem>>
    %692 = vector.broadcast %691 : f32 to vector<8x128xf32>
    %693 = arith.addf %690, %692 : vector<8x128xf32>
    %cst_174 = arith.constant 0.000000e+00 : f32
    %694 = vector.broadcast %cst_174 : f32 to vector<8x128xf32>
    %695 = arith.maximumf %693, %694 : vector<8x128xf32>
    %c57_175 = arith.constant 57 : index
    %696 = memref.load %arg4[%c57_175] : memref<64xf32, #tpu.memory_space<smem>>
    %697 = vector.broadcast %696 : f32 to vector<8x128xf32>
    %698 = arith.mulf %695, %697 : vector<8x128xf32>
    %699 = arith.addf %687, %698 : vector<8x128xf32>
    %c58 = arith.constant 58 : index
    %700 = memref.load %arg2[%c58] : memref<64xf32, #tpu.memory_space<smem>>
    %701 = vector.broadcast %700 : f32 to vector<8x128xf32>
    %702 = arith.mulf %2, %701 : vector<8x128xf32>
    %c58_176 = arith.constant 58 : index
    %703 = memref.load %arg3[%c58_176] : memref<64xf32, #tpu.memory_space<smem>>
    %704 = vector.broadcast %703 : f32 to vector<8x128xf32>
    %705 = arith.addf %702, %704 : vector<8x128xf32>
    %cst_177 = arith.constant 0.000000e+00 : f32
    %706 = vector.broadcast %cst_177 : f32 to vector<8x128xf32>
    %707 = arith.maximumf %705, %706 : vector<8x128xf32>
    %c58_178 = arith.constant 58 : index
    %708 = memref.load %arg4[%c58_178] : memref<64xf32, #tpu.memory_space<smem>>
    %709 = vector.broadcast %708 : f32 to vector<8x128xf32>
    %710 = arith.mulf %707, %709 : vector<8x128xf32>
    %711 = arith.addf %699, %710 : vector<8x128xf32>
    %c59 = arith.constant 59 : index
    %712 = memref.load %arg2[%c59] : memref<64xf32, #tpu.memory_space<smem>>
    %713 = vector.broadcast %712 : f32 to vector<8x128xf32>
    %714 = arith.mulf %2, %713 : vector<8x128xf32>
    %c59_179 = arith.constant 59 : index
    %715 = memref.load %arg3[%c59_179] : memref<64xf32, #tpu.memory_space<smem>>
    %716 = vector.broadcast %715 : f32 to vector<8x128xf32>
    %717 = arith.addf %714, %716 : vector<8x128xf32>
    %cst_180 = arith.constant 0.000000e+00 : f32
    %718 = vector.broadcast %cst_180 : f32 to vector<8x128xf32>
    %719 = arith.maximumf %717, %718 : vector<8x128xf32>
    %c59_181 = arith.constant 59 : index
    %720 = memref.load %arg4[%c59_181] : memref<64xf32, #tpu.memory_space<smem>>
    %721 = vector.broadcast %720 : f32 to vector<8x128xf32>
    %722 = arith.mulf %719, %721 : vector<8x128xf32>
    %723 = arith.addf %711, %722 : vector<8x128xf32>
    %c60 = arith.constant 60 : index
    %724 = memref.load %arg2[%c60] : memref<64xf32, #tpu.memory_space<smem>>
    %725 = vector.broadcast %724 : f32 to vector<8x128xf32>
    %726 = arith.mulf %2, %725 : vector<8x128xf32>
    %c60_182 = arith.constant 60 : index
    %727 = memref.load %arg3[%c60_182] : memref<64xf32, #tpu.memory_space<smem>>
    %728 = vector.broadcast %727 : f32 to vector<8x128xf32>
    %729 = arith.addf %726, %728 : vector<8x128xf32>
    %cst_183 = arith.constant 0.000000e+00 : f32
    %730 = vector.broadcast %cst_183 : f32 to vector<8x128xf32>
    %731 = arith.maximumf %729, %730 : vector<8x128xf32>
    %c60_184 = arith.constant 60 : index
    %732 = memref.load %arg4[%c60_184] : memref<64xf32, #tpu.memory_space<smem>>
    %733 = vector.broadcast %732 : f32 to vector<8x128xf32>
    %734 = arith.mulf %731, %733 : vector<8x128xf32>
    %735 = arith.addf %723, %734 : vector<8x128xf32>
    %c61 = arith.constant 61 : index
    %736 = memref.load %arg2[%c61] : memref<64xf32, #tpu.memory_space<smem>>
    %737 = vector.broadcast %736 : f32 to vector<8x128xf32>
    %738 = arith.mulf %2, %737 : vector<8x128xf32>
    %c61_185 = arith.constant 61 : index
    %739 = memref.load %arg3[%c61_185] : memref<64xf32, #tpu.memory_space<smem>>
    %740 = vector.broadcast %739 : f32 to vector<8x128xf32>
    %741 = arith.addf %738, %740 : vector<8x128xf32>
    %cst_186 = arith.constant 0.000000e+00 : f32
    %742 = vector.broadcast %cst_186 : f32 to vector<8x128xf32>
    %743 = arith.maximumf %741, %742 : vector<8x128xf32>
    %c61_187 = arith.constant 61 : index
    %744 = memref.load %arg4[%c61_187] : memref<64xf32, #tpu.memory_space<smem>>
    %745 = vector.broadcast %744 : f32 to vector<8x128xf32>
    %746 = arith.mulf %743, %745 : vector<8x128xf32>
    %747 = arith.addf %735, %746 : vector<8x128xf32>
    %c62 = arith.constant 62 : index
    %748 = memref.load %arg2[%c62] : memref<64xf32, #tpu.memory_space<smem>>
    %749 = vector.broadcast %748 : f32 to vector<8x128xf32>
    %750 = arith.mulf %2, %749 : vector<8x128xf32>
    %c62_188 = arith.constant 62 : index
    %751 = memref.load %arg3[%c62_188] : memref<64xf32, #tpu.memory_space<smem>>
    %752 = vector.broadcast %751 : f32 to vector<8x128xf32>
    %753 = arith.addf %750, %752 : vector<8x128xf32>
    %cst_189 = arith.constant 0.000000e+00 : f32
    %754 = vector.broadcast %cst_189 : f32 to vector<8x128xf32>
    %755 = arith.maximumf %753, %754 : vector<8x128xf32>
    %c62_190 = arith.constant 62 : index
    %756 = memref.load %arg4[%c62_190] : memref<64xf32, #tpu.memory_space<smem>>
    %757 = vector.broadcast %756 : f32 to vector<8x128xf32>
    %758 = arith.mulf %755, %757 : vector<8x128xf32>
    %759 = arith.addf %747, %758 : vector<8x128xf32>
    %c63 = arith.constant 63 : index
    %760 = memref.load %arg2[%c63] : memref<64xf32, #tpu.memory_space<smem>>
    %761 = vector.broadcast %760 : f32 to vector<8x128xf32>
    %762 = arith.mulf %2, %761 : vector<8x128xf32>
    %c63_191 = arith.constant 63 : index
    %763 = memref.load %arg3[%c63_191] : memref<64xf32, #tpu.memory_space<smem>>
    %764 = vector.broadcast %763 : f32 to vector<8x128xf32>
    %765 = arith.addf %762, %764 : vector<8x128xf32>
    %cst_192 = arith.constant 0.000000e+00 : f32
    %766 = vector.broadcast %cst_192 : f32 to vector<8x128xf32>
    %767 = arith.maximumf %765, %766 : vector<8x128xf32>
    %c63_193 = arith.constant 63 : index
    %768 = memref.load %arg4[%c63_193] : memref<64xf32, #tpu.memory_space<smem>>
    %769 = vector.broadcast %768 : f32 to vector<8x128xf32>
    %770 = arith.mulf %767, %769 : vector<8x128xf32>
    %771 = arith.addf %759, %770 : vector<8x128xf32>
    %772 = math.exp %771 : vector<8x128xf32>
    %c0_194 = arith.constant 0 : index
    %c0_195 = arith.constant 0 : index
    %773 = vector.load %arg6[%c0_194, %c0_195] : memref<8x128xf32, #tpu.memory_space<vmem>>, vector<8x128xf32>
    tpu.vector_store %arg6[%c0_194, %c0_195], %772 {strides = array<i32>} : memref<8x128xf32, #tpu.memory_space<vmem>>, vector<8x128xf32>,
    return
  }
  func.func @transform_0(%arg0: i32) -> (i32, i32) {
    %c0_i32 = arith.constant 0 : i32
    %c0_i32_0 = arith.constant 0 : i32
    return %arg0, %c0_i32 : i32, i32
  }
  func.func @transform_1(%arg0: i32) -> i32 {
    %c0_i32 = arith.constant 0 : i32
    %c0_i32_0 = arith.constant 0 : i32
    return %c0_i32 : i32
  }
  func.func @transform_2(%arg0: i32) -> i32 {
    %c0_i32 = arith.constant 0 : i32
    %c0_i32_0 = arith.constant 0 : i32
    return %c0_i32 : i32
  }
  func.func @transform_3(%arg0: i32) -> i32 {
    %c0_i32 = arith.constant 0 : i32
    %c0_i32_0 = arith.constant 0 : i32
    return %c0_i32 : i32
  }
  func.func @transform_4(%arg0: i32) -> i32 {
    %c0_i32 = arith.constant 0 : i32
    %c0_i32_0 = arith.constant 0 : i32
    return %c0_i32 : i32
  }
  func.func @transform_5(%arg0: i32) -> (i32, i32) {
    %c0_i32 = arith.constant 0 : i32
    %c0_i32_0 = arith.constant 0 : i32
    return %arg0, %c0_i32 : i32, i32
  }
}

</mosaic_0001>

<bundles_post_ra>
// kernel: tpu_custom_call.1
= control target key start
LH: loop header
LB: loop body
LE: loop exit
PB: predicated region body
PF: predicated region fallthrough
CT: control target
= control target key end

     0   :  { %11 = vsyncpa [#allocation4], 0  ;;  %s1792_s0 = inlined_call_operand.hbm [shape: f32[8,128], index: 0, kind: input, shape index: {}]   ;;  %s1793_s1 = inlined_call_operand.vmem [shape: f32[64], index: 1, kind: input, shape index: {}]   ;;  %s1794_s2 = inlined_call_operand.vmem [shape: f32[64], index: 2, kind: input, shape index: {}]   ;;  %s1795_s3 = inlined_call_operand.vmem [shape: f32[64], index: 3, kind: input, shape index: {}]   ;;  %s1796_s4 = inlined_call_operand.<no memory space> [shape: f32[1], index: 4, kind: input, shape index: {}]   ;;  %s1797_s5 = inlined_call_operand.hbm [shape: f32[8,128], index: 5, kind: output, shape index: {}]  }
   0x1   :  { %12 = vsyncpa [#allocation6], 0 }
   0x2   :  { %13 = vsyncpa [#allocation9], 0  ;;  %s41_s20 = sshll.u32 %s1794_s2, 4  ;;  %s42_s20 = int_to_ptr.vmem [resolvable:$true] %s41_s20 }
   0x3   :  { %14 = vsyncpa [#allocation5], 0  ;;  %s997_s21 = scalar_lea.vmem %s42_s20, 16  ;;  %p1002_p1 = scmp.lt.s32.totalorder %s42_s20, %s42_s20 }
   0x4   :  { %p998_p0 = scmp.ne.s32.totalorder %s42_s20, %s997_s21  ;;  %p1003_p2 = scmp.lt.s32.totalorder %s997_s21, %s997_s21 }
   0x6   :  { %p1004_p3 = por %p1003_p2, %p1002_p1 }
   0x8   :  { %p1005_p4 = pnand %p1004_p3, %p998_p0 }
   0xa   :  { %1008 = shalt.err (!%p1005_p4)
}
   0xb   :  { %s1085_s22 = smov [#allocation8]   ;;  %s1086_s23 = smov [#allocation3]  }
   0xc   :  { %44 = dma.vmem_to_smem %s42_s20, 16, %s1085_s22, [#allocation9]  }
   0xd   :  { %s21_s24 = sshll.u32 %s1086_s23, 4  ;;  %s31_s27 = sshll.u32 %s1793_s1, 4  ;;  %s22_s24 = int_to_ptr.vmem [resolvable:$true] %s21_s24  ;;  %s32_s27 = int_to_ptr.vmem [resolvable:$true] %s31_s27 }
   0xe   :  { %s1009_s29 = scalar_lea.hbm %s1792_s0, 128 }
   0xf   :  { %p1010_p5 = scmp.ne.s32.totalorder %s1792_s0, %s1009_s29  ;;  %p1013_p6 = scmp.lt.u32.totalorder %s1009_s29, %s1792_s0 }
  0x11   :  { %p1015_p7 = pnand %p1013_p6, %p1010_p5 }
  0x13   :  { %1018 = shalt.err (!%p1015_p7)
}
  0x14   :  { %s1019_s9 = scalar_lea.vmem %s22_s24, 128  ;;  %p1024_p9 = scmp.lt.s32.totalorder %s22_s24, %s22_s24 }
  0x15   :  { %p1020_p8 = scmp.ne.s32.totalorder %s22_s24, %s1019_s9  ;;  %p1025_p10 = scmp.lt.s32.totalorder %s1019_s9, %s1019_s9 }
  0x17   :  { %p1026_p11 = por %p1025_p10, %p1024_p9 }
  0x19   :  { %p1027_p12 = pnand %p1026_p11, %p1020_p8 }
  0x1b   :  { %1030 = shalt.err (!%p1027_p12)
}
  0x1c   :  { %24 = dma.hbm_to_vmem [thread:$0]  %s1792_s0, 128, %s22_s24, [#allocation4]  }
  0x1d   :  { %s51_s13 = sshll.u32 %s1795_s3, 4  ;;  %s1031_s14 = scalar_lea.vmem %s32_s27, 16  ;;  %s52_s13 = int_to_ptr.vmem [resolvable:$true] %s51_s13 }
  0x1e   :  { %p1032_p13 = scmp.ne.s32.totalorder %s32_s27, %s1031_s14  ;;  %p1036_p0 = scmp.lt.s32.totalorder %s32_s27, %s32_s27 }
  0x1f   :  { %p1037_p1 = scmp.lt.s32.totalorder %s1031_s14, %s1031_s14 }
  0x21   :  { %p1038_p2 = por %p1037_p1, %p1036_p0 }
  0x23   :  { %p1039_p3 = pnand %p1038_p2, %p1032_p13 }
  0x25   :  { %1042 = shalt.err (!%p1039_p3)
}
  0x26   :  { %s1087_s15 = smov [#allocation7]   ;;  %s1043_s16 = scalar_lea.vmem %s52_s13, 16 }
  0x27   :  { %34 = dma.vmem_to_smem %s32_s27, 16, %s1087_s15, [#allocation6]  }
  0x28   :  { %p1044_p4 = scmp.ne.s32.totalorder %s52_s13, %s1043_s16  ;;  %p1048_p5 = scmp.lt.s32.totalorder %s52_s13, %s52_s13 }
  0x29   :  { %p1049_p6 = scmp.lt.s32.totalorder %s1043_s16, %s1043_s16 }
  0x2b   :  { %p1050_p7 = por %p1049_p6, %p1048_p5 }
  0x2d   :  { %p1051_p8 = pnand %p1050_p7, %p1044_p4 }
  0x2f   :  { %1054 = shalt.err (!%p1051_p8)
}
  0x30   :  { %s1088_s0 = smov [#allocation10]  }
  0x31   :  { %54 = dma.vmem_to_smem %s52_s13, 16, %s1088_s0, [#allocation9]  }
  0x32   :  { %1077 = dma.done.wait [#allocation4], 128  }
  0x33   :  { %1078 = vsyncadd [#allocation4], 4294967168 }
  0x34   :  { %1079 = dma.done.wait [#allocation6], 16  }
  0x35   :  { %1080 = vsyncadd [#allocation6], 4294967280 }
  0x36   :  { %1081 = dma.done.wait [#allocation9], 32  }
  0x37   :  { %1082 = vsyncadd [#allocation9], 4294967264 }
  0x38   :  { %69 = sfence }
  0x39   :  { %v71_v0 = vld [vmem:[#allocation3] sm:$0xff]  ;;  %s1141_s3 = sld [smem:[#allocation7]]  ;;  %s1145_s18 = sld [smem:[#allocation7 + $0x1]]  ;;  %v74_v18 = vstv %s1796_s4 }
  0x3a   :  { %993 = vlog2.f32 %v71_v0  ;;  %s1143_s17 = sld [smem:[#allocation8]]  ;;  %s1147_s19 = sld [smem:[#allocation7 + $0x2]] }
  0x3b   :  { %s1149_s20 = sld [smem:[#allocation8 + $0x1]]  ;;  %s1151_s21 = sld [smem:[#allocation7 + $0x3]] }
  0x3c   :  { %s1153_s22 = sld [smem:[#allocation8 + $0x2]]  ;;  %s1155_s23 = sld [smem:[#allocation8 + $0x3]] }
  0x3d   :  { %s1157_s24 = sld [smem:[#allocation7 + $0x4]]  ;;  %s1161_s26 = sld [smem:[#allocation7 + $0x5]] }
  0x3e   :  { %s1159_s25 = sld [smem:[#allocation8 + $0x4]]  ;;  %s1163_s27 = sld [smem:[#allocation10]] }
  0x3f   :  { %s1165_s2 = sld [smem:[#allocation8 + $0x5]]  ;;  %s1167_s28 = sld [smem:[#allocation10 + $0x1]]  ;;  %v76_v2 = vstv %s1141_s3  ;;  %v87_v3 = vstv %s1145_s18 }
  0x40   :  { %s1169_s29 = sld [smem:[#allocation7 + $0x6]]  ;;  %s1171_s30 = sld [smem:[#allocation10 + $0x2]]  ;;  %v98_v4 = vstv %s1147_s19  ;;  %v79_v7 = vstv %s1143_s17 }
  0x41   :  { %v109_v5 = vstv %s1151_s21  ;;  %s1177_s6 = sld [smem:[#allocation8 + $0x6]]  ;;  %v90_v8 = vstv %s1149_s20  ;;  %s1183_s7 = sld [smem:[#allocation10 + $0x3]] }
  0x42   :  { %s1186_s8 = sld [smem:[#allocation10 + $0x4]]  ;;  %v101_v10 = vstv %s1153_s22  ;;  %v112_v11 = vstv %s1155_s23  ;;  %s1192_s9 = sld [smem:[#allocation10 + $0x5]] }
  0x43   :  { %v120_v9 = vstv %s1157_s24  ;;  %v131_v13 = vstv %s1161_s26  ;;  %s1194_s1 = sld [smem:[#allocation7 + $0x7]]  ;;  %s1208_s13 = sld [smem:[#allocation7 + $0x8]] }
  0x44   :  { %v994_v1 = vpop.eup %993  ;;  %v123_v12 = vstv %s1159_s25  ;;  %s1200_s10 = sld [smem:[#allocation8 + $0x7]]  ;;  %s1210_s14 = sld [smem:[#allocation8 + $0x8]]  ;;  %v83_v26 = vstv %s1163_s27 }
  0x45   :  { %v1179_v6 = vmul.f32 0.6931472, %v994_v1  ;;  %v134_v21 = vstv %s1165_s2  ;;  %s1212_s15 = sld [smem:[#allocation7 + $0x9]]  ;;  %v94_v27 = vstv %s1167_s28  ;;  %s1217_s4 = sld [smem:[#allocation10 + $0x6]] }
  0x46   :  { %v142_v29 = vstv %s1169_s29  ;;  %s1219_s16 = sld [smem:[#allocation8 + $0x9]]  ;;  %v105_v33 = vstv %s1171_s30  ;;  %s1222_s0 = sld [smem:[#allocation7 + $0xa]] }
  0x47   :  { %v77_v14 = vmul.f32 %v76_v2, %v1179_v6  ;;  %v88_v15 = vmul.f32 %v87_v3, %v1179_v6  ;;  %v99_v16 = vmul.f32 %v98_v4, %v1179_v6  ;;  %v110_v17 = vmul.f32 %v109_v5, %v1179_v6  ;;  %s1226_s3 = sld [smem:[#allocation8 + $0xa]]  ;;  %s1230_s17 = sld [smem:[#allocation10 + $0x7]] }
  0x48   :  { %v121_v19 = vmul.f32 %v120_v9, %v1179_v6  ;;  %v132_v20 = vmul.f32 %v131_v13, %v1179_v6  ;;  %v143_v36 = vmul.f32 %v142_v29, %v1179_v6  ;;  %v145_v37 = vstv %s1177_s6  ;;  %s1232_s18 = sld [smem:[#allocation7 + $0xb]]  ;;  %s1240_s20 = sld [smem:[#allocation10 + $0x8]] }
  0x49   :  { %v80_v22 = vadd.f32 %v79_v7, %v77_v14  ;;  %v91_v23 = vadd.f32 %v90_v8, %v88_v15  ;;  %v102_v24 = vadd.f32 %v101_v10, %v99_v16  ;;  %v113_v25 = vadd.f32 %v112_v11, %v110_v17  ;;  %s1236_s19 = sld [smem:[#allocation8 + $0xb]]  ;;  %s1242_s21 = sld [smem:[#allocation7 + $0xc]] }
  0x4a   :  { %v124_v28 = vadd.f32 %v123_v12, %v121_v19  ;;  %v135_v35 = vadd.f32 %v134_v21, %v132_v20  ;;  %v116_v40 = vstv %s1183_s7  ;;  %v127_v41 = vstv %s1186_s8  ;;  %s1246_s22 = sld [smem:[#allocation10 + $0x9]]  ;;  %s1250_s23 = sld [smem:[#allocation8 + $0xc]] }
  0x4b   :  { %v81_v30 = vmax.f32 %v80_v22, 0.0  ;;  %v92_v31 = vmax.f32 %v91_v23, 0.0  ;;  %v103_v32 = vmax.f32 %v102_v24, 0.0  ;;  %v114_v34 = vmax.f32 %v113_v25, 0.0  ;;  %s1252_s24 = sld [smem:[#allocation7 + $0xd]]  ;;  %s1257_s25 = sld [smem:[#allocation10 + $0xa]] }
  0x4c   :  { %v125_v43 = vmax.f32 %v124_v28, 0.0  ;;  %v138_v44 = vstv %s1192_s9  ;;  %v153_v45 = vstv %s1194_s1  ;;  %v146_v47 = vadd.f32 %v145_v37, %v143_v36  ;;  %s1260_s26 = sld [smem:[#allocation8 + $0xd]]  ;;  %s1262_s27 = sld [smem:[#allocation7 + $0xe]] }
  0x4d   :  { %v84_v38 = vmul.f32 %v83_v26, %v81_v30  ;;  %v95_v39 = vmul.f32 %v94_v27, %v92_v31  ;;  %v106_v42 = vmul.f32 %v105_v33, %v103_v32  ;;  %v154_v48 = vmul.f32 %v153_v45, %v1179_v6  ;;  %s1266_s2 = sld [smem:[#allocation10 + $0xb]]  ;;  %s1270_s28 = sld [smem:[#allocation8 + $0xe]] }
  0x4e   :  { %v156_v49 = vstv %s1200_s10  ;;  %v117_v50 = vmul.f32 %v116_v40, %v114_v34  ;;  %v136_v51 = vmax.f32 %v135_v35, 0.0  ;;  %v164_v52 = vstv %s1208_s13  ;;  %s1272_s29 = sld [smem:[#allocation7 + $0xf]]  ;;  %s1276_s30 = sld [smem:[#allocation10 + $0xc]] }
  0x4f   :  { %v85_v46 = vadd.f32 %v84_v38, %v74_v18  ;;  %v167_v53 = vstv %s1210_s14  ;;  %v157_v55 = vadd.f32 %v156_v49, %v154_v48  ;;  %v165_v56 = vmul.f32 %v164_v52, %v1179_v6  ;;  %s1280_s6 = sld [smem:[#allocation8 + $0xf]]  ;;  %s1282_s7 = sld [smem:[#allocation7 + $0x10]] }
  0x50   :  { %v175_v57 = vstv %s1212_s15  ;;  %v128_v58 = vmul.f32 %v127_v41, %v125_v43  ;;  %v149_v59 = vstv %s1217_s4  ;;  %v178_v61 = vstv %s1219_s16  ;;  %s1286_s8 = sld [smem:[#allocation10 + $0xd]]  ;;  %s1290_s9 = sld [smem:[#allocation8 + $0x10]] }
  0x51   :  { %v96_v54 = vadd.f32 %v95_v39, %v85_v46  ;;  %v176_v60 = vmul.f32 %v175_v57, %v1179_v6  ;;  %v147_v63 = vmax.f32 %v146_v47, 0.0  ;;  %v168_v0 = vadd.f32 %v167_v53, %v165_v56  ;;  %s1292_s1 = sld [smem:[#allocation7 + $0x11]]  ;;  %s1296_s10 = sld [smem:[#allocation10 + $0xe]] }
  0x52   :  { %v186_v1 = vstv %s1222_s0  ;;  %v139_v2 = vmul.f32 %v138_v44, %v136_v51  ;;  %v189_v5 = vstv %s1226_s3  ;;  %v158_v8 = vmax.f32 %v157_v55, 0.0  ;;  %s1300_s11 = sld [smem:[#allocation8 + $0x11]]  ;;  %s1302_s12 = sld [smem:[#allocation7 + $0x12]] }
  0x53   :  { %v107_v62 = vadd.f32 %v106_v42, %v96_v54  ;;  %v179_v3 = vadd.f32 %v178_v61, %v176_v60  ;;  %v187_v4 = vmul.f32 %v186_v1, %v1179_v6  ;;  %v160_v9 = vstv %s1230_s17  ;;  %s1306_s13 = sld [smem:[#allocation10 + $0xf]]  ;;  %s1310_s14 = sld [smem:[#allocation8 + $0x12]] }
  0x54   :  { %v197_v10 = vstv %s1232_s18  ;;  %v169_v11 = vmax.f32 %v168_v0, 0.0  ;;  %v200_v14 = vstv %s1236_s19  ;;  %v150_v16 = vmul.f32 %v149_v59, %v147_v63  ;;  %s1312_s15 = sld [smem:[#allocation7 + $0x13]]  ;;  %s1316_s4 = sld [smem:[#allocation10 + $0x10]] }
  0x55   :  { %v118_v7 = vadd.f32 %v117_v50, %v107_v62  ;;  %v190_v12 = vadd.f32 %v189_v5, %v187_v4  ;;  %v198_v13 = vmul.f32 %v197_v10, %v1179_v6  ;;  %v171_v17 = vstv %s1240_s20  ;;  %s1320_s16 = sld [smem:[#allocation8 + $0x13]]  ;;  %s1322_s0 = sld [smem:[#allocation7 + $0x14]] }
  0x56   :  { %v208_v18 = vstv %s1242_s21  ;;  %v180_v19 = vmax.f32 %v179_v3, 0.0  ;;  %v182_v20 = vstv %s1246_s22  ;;  %v161_v24 = vmul.f32 %v160_v9, %v158_v8  ;;  %s1326_s3 = sld [smem:[#allocation10 + $0x11]]  ;;  %s1330_s17 = sld [smem:[#allocation8 + $0x14]] }
  0x57   :  { %v129_v15 = vadd.f32 %v128_v58, %v118_v7  ;;  %v201_v21 = vadd.f32 %v200_v14, %v198_v13  ;;  %v209_v22 = vmul.f32 %v208_v18, %v1179_v6  ;;  %v211_v25 = vstv %s1250_s23  ;;  %s1332_s18 = sld [smem:[#allocation7 + $0x15]]  ;;  %s1336_s19 = sld [smem:[#allocation10 + $0x12]] }
  0x58   :  { %v219_v26 = vstv %s1252_s24  ;;  %v172_v27 = vmul.f32 %v171_v17, %v169_v11  ;;  %v191_v28 = vmax.f32 %v190_v12, 0.0  ;;  %v193_v29 = vstv %s1257_s25  ;;  %s1340_s20 = sld [smem:[#allocation8 + $0x15]]  ;;  %s1342_s21 = sld [smem:[#allocation7 + $0x16]] }
  0x59   :  { %v140_v23 = vadd.f32 %v139_v2, %v129_v15  ;;  %v220_v30 = vmul.f32 %v219_v26, %v1179_v6  ;;  %v212_v32 = vadd.f32 %v211_v25, %v209_v22  ;;  %v222_v33 = vstv %s1260_s26  ;;  %s1346_s22 = sld [smem:[#allocation10 + $0x13]]  ;;  %s1350_s23 = sld [smem:[#allocation8 + $0x16]] }
  0x5a   :  { %v230_v34 = vstv %s1262_s27  ;;  %v183_v35 = vmul.f32 %v182_v20, %v180_v19  ;;  %v202_v36 = vmax.f32 %v201_v21, 0.0  ;;  %v204_v37 = vstv %s1266_s2  ;;  %s1352_s24 = sld [smem:[#allocation7 + $0x17]]  ;;  %s1356_s25 = sld [smem:[#allocation10 + $0x14]] }
  0x5b   :  { %v151_v31 = vadd.f32 %v150_v16, %v140_v23  ;;  %v231_v38 = vmul.f32 %v230_v34, %v1179_v6  ;;  %v223_v40 = vadd.f32 %v222_v33, %v220_v30  ;;  %v233_v41 = vstv %s1270_s28  ;;  %s1360_s26 = sld [smem:[#allocation8 + $0x17]]  ;;  %s1362_s27 = sld [smem:[#allocation7 + $0x18]] }
  0x5c   :  { %v241_v42 = vstv %s1272_s29  ;;  %v194_v43 = vmul.f32 %v193_v29, %v191_v28  ;;  %v215_v44 = vstv %s1276_s30  ;;  %v213_v48 = vmax.f32 %v212_v32, 0.0  ;;  %s1366_s2 = sld [smem:[#allocation10 + $0x15]]  ;;  %s1370_s28 = sld [smem:[#allocation8 + $0x18]] }
  0x5d   :  { %v162_v39 = vadd.f32 %v161_v24, %v151_v31  ;;  %v234_v45 = vadd.f32 %v233_v41, %v231_v38  ;;  %v242_v46 = vmul.f32 %v241_v42, %v1179_v6  ;;  %v244_v49 = vstv %s1280_s6  ;;  %s1372_s29 = sld [smem:[#allocation7 + $0x19]]  ;;  %s1376_s30 = sld [smem:[#allocation10 + $0x16]] }
  0x5e   :  { %v252_v50 = vstv %s1282_s7  ;;  %v205_v51 = vmul.f32 %v204_v37, %v202_v36  ;;  %v226_v52 = vstv %s1286_s8  ;;  %v224_v56 = vmax.f32 %v223_v40, 0.0  ;;  %s1380_s6 = sld [smem:[#allocation8 + $0x19]]  ;;  %s1382_s7 = sld [smem:[#allocation7 + $0x1a]] }
  0x5f   :  { %v173_v47 = vadd.f32 %v172_v27, %v162_v39  ;;  %v245_v53 = vadd.f32 %v244_v49, %v242_v46  ;;  %v253_v54 = vmul.f32 %v252_v50, %v1179_v6  ;;  %v255_v57 = vstv %s1290_s9  ;;  %s1386_s8 = sld [smem:[#allocation10 + $0x17]]  ;;  %s1390_s9 = sld [smem:[#allocation8 + $0x1a]] }
  0x60   :  { %v263_v58 = vstv %s1292_s1  ;;  %v235_v59 = vmax.f32 %v234_v45, 0.0  ;;  %v237_v60 = vstv %s1296_s10  ;;  %v216_v0 = vmul.f32 %v215_v44, %v213_v48  ;;  %s1392_s1 = sld [smem:[#allocation7 + $0x1b]]  ;;  %s1396_s10 = sld [smem:[#allocation10 + $0x18]] }
  0x61   :  { %v184_v55 = vadd.f32 %v183_v35, %v173_v47  ;;  %v256_v61 = vadd.f32 %v255_v57, %v253_v54  ;;  %v264_v62 = vmul.f32 %v263_v58, %v1179_v6  ;;  %v266_v1 = vstv %s1300_s11  ;;  %s1400_s11 = sld [smem:[#allocation8 + $0x1b]] }
  0x62   :  { %v274_v2 = vstv %s1302_s12  ;;  %v246_v3 = vmax.f32 %v245_v53, 0.0  ;;  %v248_v4 = vstv %s1306_s13  ;;  %v227_v9 = vmul.f32 %v226_v52, %v224_v56  ;;  %s1402_s12 = sld [smem:[#allocation7 + $0x1c]]  ;;  %s1406_s13 = sld [smem:[#allocation10 + $0x19]] }
  0x63   :  { %v195_v63 = vadd.f32 %v194_v43, %v184_v55  ;;  %v267_v5 = vadd.f32 %v266_v1, %v264_v62  ;;  %v275_v7 = vmul.f32 %v274_v2, %v1179_v6  ;;  %v277_v10 = vstv %s1310_s14  ;;  %s1410_s14 = sld [smem:[#allocation8 + $0x1c]] }
  0x64   :  { %v285_v11 = vstv %s1312_s15  ;;  %v238_v12 = vmul.f32 %v237_v60, %v235_v59  ;;  %v257_v13 = vmax.f32 %v256_v61, 0.0  ;;  %v259_v14 = vstv %s1316_s4  ;;  %s1412_s15 = sld [smem:[#allocation7 + $0x1d]]  ;;  %s1416_s4 = sld [smem:[#allocation10 + $0x1a]] }
  0x65   :  { %v206_v8 = vadd.f32 %v205_v51, %v195_v63  ;;  %v286_v15 = vmul.f32 %v285_v11, %v1179_v6  ;;  %v278_v17 = vadd.f32 %v277_v10, %v275_v7  ;;  %v288_v18 = vstv %s1320_s16  ;;  %s1420_s16 = sld [smem:[#allocation8 + $0x1d]] }
  0x66   :  { %v296_v19 = vstv %s1322_s0  ;;  %v249_v20 = vmul.f32 %v248_v4, %v246_v3  ;;  %v268_v21 = vmax.f32 %v267_v5, 0.0  ;;  %v270_v22 = vstv %s1326_s3  ;;  %s1422_s0 = sld [smem:[#allocation7 + $0x1e]]  ;;  %s1426_s3 = sld [smem:[#allocation10 + $0x1b]] }
  0x67   :  { %v217_v16 = vadd.f32 %v216_v0, %v206_v8  ;;  %v297_v23 = vmul.f32 %v296_v19, %v1179_v6  ;;  %v289_v25 = vadd.f32 %v288_v18, %v286_v15  ;;  %v299_v26 = vstv %s1330_s17  ;;  %s1430_s17 = sld [smem:[#allocation8 + $0x1e]] }
  0x68   :  { %v307_v27 = vstv %s1332_s18  ;;  %v260_v28 = vmul.f32 %v259_v14, %v257_v13  ;;  %v281_v29 = vstv %s1336_s19  ;;  %v279_v33 = vmax.f32 %v278_v17, 0.0  ;;  %s1432_s18 = sld [smem:[#allocation7 + $0x1f]]  ;;  %s1436_s19 = sld [smem:[#allocation10 + $0x1c]] }
  0x69   :  { %v228_v24 = vadd.f32 %v227_v9, %v217_v16  ;;  %v300_v30 = vadd.f32 %v299_v26, %v297_v23  ;;  %v308_v31 = vmul.f32 %v307_v27, %v1179_v6  ;;  %v310_v34 = vstv %s1340_s20  ;;  %s1440_s20 = sld [smem:[#allocation8 + $0x1f]] }
  0x6a   :  { %v318_v35 = vstv %s1342_s21  ;;  %v271_v36 = vmul.f32 %v270_v22, %v268_v21  ;;  %v292_v37 = vstv %s1346_s22  ;;  %v290_v41 = vmax.f32 %v289_v25, 0.0  ;;  %s1442_s21 = sld [smem:[#allocation7 + $0x20]]  ;;  %s1446_s22 = sld [smem:[#allocation10 + $0x1d]] }
  0x6b   :  { %v239_v32 = vadd.f32 %v238_v12, %v228_v24  ;;  %v311_v38 = vadd.f32 %v310_v34, %v308_v31  ;;  %v319_v39 = vmul.f32 %v318_v35, %v1179_v6  ;;  %v321_v42 = vstv %s1350_s23  ;;  %s1450_s23 = sld [smem:[#allocation8 + $0x20]] }
  0x6c   :  { %v329_v43 = vstv %s1352_s24  ;;  %v301_v44 = vmax.f32 %v300_v30, 0.0  ;;  %v303_v45 = vstv %s1356_s25  ;;  %v282_v49 = vmul.f32 %v281_v29, %v279_v33  ;;  %s1452_s24 = sld [smem:[#allocation7 + $0x21]]  ;;  %s1456_s25 = sld [smem:[#allocation10 + $0x1e]] }
  0x6d   :  { %v250_v40 = vadd.f32 %v249_v20, %v239_v32  ;;  %v322_v46 = vadd.f32 %v321_v42, %v319_v39  ;;  %v330_v47 = vmul.f32 %v329_v43, %v1179_v6  ;;  %v332_v50 = vstv %s1360_s26  ;;  %s1460_s26 = sld [smem:[#allocation8 + $0x21]] }
  0x6e   :  { %v340_v51 = vstv %s1362_s27  ;;  %v312_v52 = vmax.f32 %v311_v38, 0.0  ;;  %v314_v53 = vstv %s1366_s2  ;;  %v293_v57 = vmul.f32 %v292_v37, %v290_v41  ;;  %s1462_s27 = sld [smem:[#allocation7 + $0x22]]  ;;  %s1466_s2 = sld [smem:[#allocation10 + $0x1f]] }
  0x6f   :  { %v261_v48 = vadd.f32 %v260_v28, %v250_v40  ;;  %v333_v54 = vadd.f32 %v332_v50, %v330_v47  ;;  %v341_v55 = vmul.f32 %v340_v51, %v1179_v6  ;;  %v343_v58 = vstv %s1370_s28  ;;  %s1470_s28 = sld [smem:[#allocation8 + $0x22]] }
  0x70   :  { %v351_v59 = vstv %s1372_s29  ;;  %v304_v60 = vmul.f32 %v303_v45, %v301_v44  ;;  %v323_v61 = vmax.f32 %v322_v46, 0.0  ;;  %v325_v62 = vstv %s1376_s30  ;;  %s1472_s29 = sld [smem:[#allocation7 + $0x23]]  ;;  %s1476_s30 = sld [smem:[#allocation10 + $0x20]] }
  0x71   :  { %v272_v56 = vadd.f32 %v271_v36, %v261_v48  ;;  %v352_v63 = vmul.f32 %v351_v59, %v1179_v6  ;;  %v344_v1 = vadd.f32 %v343_v58, %v341_v55  ;;  %v354_v2 = vstv %s1380_s6  ;;  %s1480_s6 = sld [smem:[#allocation8 + $0x23]] }
  0x72   :  { %v362_v3 = vstv %s1382_s7  ;;  %v315_v4 = vmul.f32 %v314_v53, %v312_v52  ;;  %v334_v5 = vmax.f32 %v333_v54, 0.0  ;;  %v336_v7 = vstv %s1386_s8  ;;  %s1482_s7 = sld [smem:[#allocation7 + $0x24]]  ;;  %s1486_s8 = sld [smem:[#allocation10 + $0x21]] }
  0x73   :  { %v283_v0 = vadd.f32 %v282_v49, %v272_v56  ;;  %v363_v8 = vmul.f32 %v362_v3, %v1179_v6  ;;  %v355_v10 = vadd.f32 %v354_v2, %v352_v63  ;;  %v365_v11 = vstv %s1390_s9  ;;  %s1490_s9 = sld [smem:[#allocation8 + $0x24]] }
  0x74   :  { %v373_v12 = vstv %s1392_s1  ;;  %v326_v13 = vmul.f32 %v325_v62, %v323_v61  ;;  %v347_v14 = vstv %s1396_s10  ;;  %v345_v18 = vmax.f32 %v344_v1, 0.0  ;;  %s1492_s1 = sld [smem:[#allocation7 + $0x25]]  ;;  %s1496_s10 = sld [smem:[#allocation10 + $0x22]] }
  0x75   :  { %v294_v9 = vadd.f32 %v293_v57, %v283_v0  ;;  %v366_v15 = vadd.f32 %v365_v11, %v363_v8  ;;  %v374_v16 = vmul.f32 %v373_v12, %v1179_v6  ;;  %v376_v19 = vstv %s1400_s11  ;;  %s1500_s11 = sld [smem:[#allocation8 + $0x25]] }
  0x76   :  { %v384_v20 = vstv %s1402_s12  ;;  %v337_v21 = vmul.f32 %v336_v7, %v334_v5  ;;  %v358_v22 = vstv %s1406_s13  ;;  %v356_v26 = vmax.f32 %v355_v10, 0.0  ;;  %s1502_s12 = sld [smem:[#allocation7 + $0x26]]  ;;  %s1506_s13 = sld [smem:[#allocation10 + $0x23]] }
  0x77   :  { %v305_v17 = vadd.f32 %v304_v60, %v294_v9  ;;  %v377_v23 = vadd.f32 %v376_v19, %v374_v16  ;;  %v385_v24 = vmul.f32 %v384_v20, %v1179_v6  ;;  %v387_v27 = vstv %s1410_s14  ;;  %s1510_s14 = sld [smem:[#allocation8 + $0x26]] }
  0x78   :  { %v395_v28 = vstv %s1412_s15  ;;  %v367_v29 = vmax.f32 %v366_v15, 0.0  ;;  %v369_v30 = vstv %s1416_s4  ;;  %v348_v34 = vmul.f32 %v347_v14, %v345_v18  ;;  %s1512_s15 = sld [smem:[#allocation7 + $0x27]]  ;;  %s1516_s4 = sld [smem:[#allocation10 + $0x24]] }
  0x79   :  { %v316_v25 = vadd.f32 %v315_v4, %v305_v17  ;;  %v388_v31 = vadd.f32 %v387_v27, %v385_v24  ;;  %v396_v32 = vmul.f32 %v395_v28, %v1179_v6  ;;  %v398_v35 = vstv %s1420_s16  ;;  %s1520_s16 = sld [smem:[#allocation8 + $0x27]] }
  0x7a   :  { %v406_v36 = vstv %s1422_s0  ;;  %v378_v37 = vmax.f32 %v377_v23, 0.0  ;;  %v380_v38 = vstv %s1426_s3  ;;  %v359_v42 = vmul.f32 %v358_v22, %v356_v26  ;;  %s1522_s0 = sld [smem:[#allocation7 + $0x28]]  ;;  %s1526_s3 = sld [smem:[#allocation10 + $0x25]] }
  0x7b   :  { %v327_v33 = vadd.f32 %v326_v13, %v316_v25  ;;  %v399_v39 = vadd.f32 %v398_v35, %v396_v32  ;;  %v407_v40 = vmul.f32 %v406_v36, %v1179_v6  ;;  %v409_v43 = vstv %s1430_s17  ;;  %s1530_s17 = sld [smem:[#allocation8 + $0x28]] }
  0x7c   :  { %v417_v44 = vstv %s1432_s18  ;;  %v370_v45 = vmul.f32 %v369_v30, %v367_v29  ;;  %v389_v46 = vmax.f32 %v388_v31, 0.0  ;;  %v391_v47 = vstv %s1436_s19  ;;  %s1532_s18 = sld [smem:[#allocation7 + $0x29]]  ;;  %s1536_s19 = sld [smem:[#allocation10 + $0x26]] }
  0x7d   :  { %v338_v41 = vadd.f32 %v337_v21, %v327_v33  ;;  %v418_v48 = vmul.f32 %v417_v44, %v1179_v6  ;;  %v410_v50 = vadd.f32 %v409_v43, %v407_v40  ;;  %v420_v51 = vstv %s1440_s20  ;;  %s1540_s20 = sld [smem:[#allocation8 + $0x29]] }
  0x7e   :  { %v428_v52 = vstv %s1442_s21  ;;  %v381_v53 = vmul.f32 %v380_v38, %v378_v37  ;;  %v400_v54 = vmax.f32 %v399_v39, 0.0  ;;  %v402_v55 = vstv %s1446_s22  ;;  %s1542_s21 = sld [smem:[#allocation7 + $0x2a]]  ;;  %s1546_s22 = sld [smem:[#allocation10 + $0x27]] }
  0x7f   :  { %v349_v49 = vadd.f32 %v348_v34, %v338_v41  ;;  %v429_v56 = vmul.f32 %v428_v52, %v1179_v6  ;;  %v421_v58 = vadd.f32 %v420_v51, %v418_v48  ;;  %v431_v59 = vstv %s1450_s23  ;;  %s1550_s23 = sld [smem:[#allocation8 + $0x2a]] }
  0x80   :  { %v439_v60 = vstv %s1452_s24  ;;  %v392_v61 = vmul.f32 %v391_v47, %v389_v46  ;;  %v413_v62 = vstv %s1456_s25  ;;  %v411_v2 = vmax.f32 %v410_v50, 0.0  ;;  %s1552_s24 = sld [smem:[#allocation7 + $0x2b]]  ;;  %s1556_s25 = sld [smem:[#allocation10 + $0x28]] }
  0x81   :  { %v360_v57 = vadd.f32 %v359_v42, %v349_v49  ;;  %v432_v63 = vadd.f32 %v431_v59, %v429_v56  ;;  %v440_v0 = vmul.f32 %v439_v60, %v1179_v6  ;;  %v442_v3 = vstv %s1460_s26  ;;  %s1560_s26 = sld [smem:[#allocation8 + $0x2b]] }
  0x82   :  { %v450_v4 = vstv %s1462_s27  ;;  %v403_v5 = vmul.f32 %v402_v55, %v400_v54  ;;  %v424_v7 = vstv %s1466_s2  ;;  %v422_v11 = vmax.f32 %v421_v58, 0.0  ;;  %s1562_s27 = sld [smem:[#allocation7 + $0x2c]]  ;;  %s1566_s2 = sld [smem:[#allocation10 + $0x29]] }
  0x83   :  { %v371_v1 = vadd.f32 %v370_v45, %v360_v57  ;;  %v443_v8 = vadd.f32 %v442_v3, %v440_v0  ;;  %v451_v9 = vmul.f32 %v450_v4, %v1179_v6  ;;  %v453_v12 = vstv %s1470_s28  ;;  %s1570_s28 = sld [smem:[#allocation8 + $0x2c]] }
  0x84   :  { %v461_v13 = vstv %s1472_s29  ;;  %v433_v14 = vmax.f32 %v432_v63, 0.0  ;;  %v435_v15 = vstv %s1476_s30  ;;  %v414_v19 = vmul.f32 %v413_v62, %v411_v2  ;;  %s1572_s29 = sld [smem:[#allocation7 + $0x2d]]  ;;  %s1576_s30 = sld [smem:[#allocation10 + $0x2a]] }
  0x85   :  { %v382_v10 = vadd.f32 %v381_v53, %v371_v1  ;;  %v454_v16 = vadd.f32 %v453_v12, %v451_v9  ;;  %v462_v17 = vmul.f32 %v461_v13, %v1179_v6  ;;  %v464_v20 = vstv %s1480_s6  ;;  %s1580_s6 = sld [smem:[#allocation8 + $0x2d]] }
  0x86   :  { %v472_v21 = vstv %s1482_s7  ;;  %v444_v22 = vmax.f32 %v443_v8, 0.0  ;;  %v446_v23 = vstv %s1486_s8  ;;  %v425_v27 = vmul.f32 %v424_v7, %v422_v11  ;;  %s1582_s7 = sld [smem:[#allocation7 + $0x2e]]  ;;  %s1586_s8 = sld [smem:[#allocation10 + $0x2b]] }
  0x87   :  { %v393_v18 = vadd.f32 %v392_v61, %v382_v10  ;;  %v465_v24 = vadd.f32 %v464_v20, %v462_v17  ;;  %v473_v25 = vmul.f32 %v472_v21, %v1179_v6  ;;  %v475_v28 = vstv %s1490_s9  ;;  %s1590_s9 = sld [smem:[#allocation8 + $0x2e]] }
  0x88   :  { %v483_v29 = vstv %s1492_s1  ;;  %v436_v30 = vmul.f32 %v435_v15, %v433_v14  ;;  %v455_v31 = vmax.f32 %v454_v16, 0.0  ;;  %v457_v32 = vstv %s1496_s10  ;;  %s1592_s1 = sld [smem:[#allocation7 + $0x2f]]  ;;  %s1596_s10 = sld [smem:[#allocation10 + $0x2c]] }
  0x89   :  { %v404_v26 = vadd.f32 %v403_v5, %v393_v18  ;;  %v484_v33 = vmul.f32 %v483_v29, %v1179_v6  ;;  %v476_v35 = vadd.f32 %v475_v28, %v473_v25  ;;  %v486_v36 = vstv %s1500_s11  ;;  %s1600_s11 = sld [smem:[#allocation8 + $0x2f]] }
  0x8a   :  { %v494_v37 = vstv %s1502_s12  ;;  %v447_v38 = vmul.f32 %v446_v23, %v444_v22  ;;  %v466_v39 = vmax.f32 %v465_v24, 0.0  ;;  %v468_v40 = vstv %s1506_s13  ;;  %s1602_s12 = sld [smem:[#allocation7 + $0x30]]  ;;  %s1606_s13 = sld [smem:[#allocation10 + $0x2d]] }
  0x8b   :  { %v415_v34 = vadd.f32 %v414_v19, %v404_v26  ;;  %v495_v41 = vmul.f32 %v494_v37, %v1179_v6  ;;  %v487_v43 = vadd.f32 %v486_v36, %v484_v33  ;;  %v497_v44 = vstv %s1510_s14  ;;  %s1610_s14 = sld [smem:[#allocation8 + $0x30]] }
  0x8c   :  { %v505_v45 = vstv %s1512_s15  ;;  %v458_v46 = vmul.f32 %v457_v32, %v455_v31  ;;  %v479_v47 = vstv %s1516_s4  ;;  %v477_v51 = vmax.f32 %v476_v35, 0.0  ;;  %s1612_s15 = sld [smem:[#allocation7 + $0x31]]  ;;  %s1616_s4 = sld [smem:[#allocation10 + $0x2e]] }
  0x8d   :  { %v426_v42 = vadd.f32 %v425_v27, %v415_v34  ;;  %v498_v48 = vadd.f32 %v497_v44, %v495_v41  ;;  %v506_v49 = vmul.f32 %v505_v45, %v1179_v6  ;;  %v508_v52 = vstv %s1520_s16  ;;  %s1620_s16 = sld [smem:[#allocation8 + $0x31]] }
  0x8e   :  { %v516_v53 = vstv %s1522_s0  ;;  %v469_v54 = vmul.f32 %v468_v40, %v466_v39  ;;  %v490_v55 = vstv %s1526_s3  ;;  %v488_v59 = vmax.f32 %v487_v43, 0.0  ;;  %s1622_s0 = sld [smem:[#allocation7 + $0x32]]  ;;  %s1626_s3 = sld [smem:[#allocation10 + $0x2f]] }
  0x8f   :  { %v437_v50 = vadd.f32 %v436_v30, %v426_v42  ;;  %v509_v56 = vadd.f32 %v508_v52, %v506_v49  ;;  %v517_v57 = vmul.f32 %v516_v53, %v1179_v6  ;;  %v519_v60 = vstv %s1530_s17  ;;  %s1630_s17 = sld [smem:[#allocation8 + $0x32]] }
  0x90   :  { %v527_v61 = vstv %s1532_s18  ;;  %v499_v62 = vmax.f32 %v498_v48, 0.0  ;;  %v501_v63 = vstv %s1536_s19  ;;  %v480_v3 = vmul.f32 %v479_v47, %v477_v51  ;;  %s1632_s18 = sld [smem:[#allocation7 + $0x33]]  ;;  %s1636_s19 = sld [smem:[#allocation10 + $0x30]] }
  0x91   :  { %v448_v58 = vadd.f32 %v447_v38, %v437_v50  ;;  %v520_v0 = vadd.f32 %v519_v60, %v517_v57  ;;  %v528_v1 = vmul.f32 %v527_v61, %v1179_v6  ;;  %v530_v4 = vstv %s1540_s20  ;;  %s1640_s20 = sld [smem:[#allocation8 + $0x33]] }
  0x92   :  { %v538_v5 = vstv %s1542_s21  ;;  %v510_v7 = vmax.f32 %v509_v56, 0.0  ;;  %v512_v8 = vstv %s1546_s22  ;;  %v491_v12 = vmul.f32 %v490_v55, %v488_v59  ;;  %s1642_s21 = sld [smem:[#allocation7 + $0x34]]  ;;  %s1646_s22 = sld [smem:[#allocation10 + $0x31]] }
  0x93   :  { %v459_v2 = vadd.f32 %v458_v46, %v448_v58  ;;  %v531_v9 = vadd.f32 %v530_v4, %v528_v1  ;;  %v539_v10 = vmul.f32 %v538_v5, %v1179_v6  ;;  %v541_v13 = vstv %s1550_s23  ;;  %s1650_s23 = sld [smem:[#allocation8 + $0x34]] }
  0x94   :  { %v549_v14 = vstv %s1552_s24  ;;  %v502_v15 = vmul.f32 %v501_v63, %v499_v62  ;;  %v521_v16 = vmax.f32 %v520_v0, 0.0  ;;  %v523_v17 = vstv %s1556_s25  ;;  %s1652_s24 = sld [smem:[#allocation7 + $0x35]]  ;;  %s1656_s25 = sld [smem:[#allocation10 + $0x32]] }
  0x95   :  { %v470_v11 = vadd.f32 %v469_v54, %v459_v2  ;;  %v550_v18 = vmul.f32 %v549_v14, %v1179_v6  ;;  %v542_v20 = vadd.f32 %v541_v13, %v539_v10  ;;  %v552_v21 = vstv %s1560_s26  ;;  %s1660_s26 = sld [smem:[#allocation8 + $0x35]] }
  0x96   :  { %v560_v22 = vstv %s1562_s27  ;;  %v513_v23 = vmul.f32 %v512_v8, %v510_v7  ;;  %v532_v24 = vmax.f32 %v531_v9, 0.0  ;;  %v534_v25 = vstv %s1566_s2  ;;  %s1662_s27 = sld [smem:[#allocation7 + $0x36]]  ;;  %s1666_s2 = sld [smem:[#allocation10 + $0x33]] }
  0x97   :  { %v481_v19 = vadd.f32 %v480_v3, %v470_v11  ;;  %v561_v26 = vmul.f32 %v560_v22, %v1179_v6  ;;  %v553_v28 = vadd.f32 %v552_v21, %v550_v18  ;;  %v563_v29 = vstv %s1570_s28  ;;  %s1670_s28 = sld [smem:[#allocation8 + $0x36]] }
  0x98   :  { %v571_v30 = vstv %s1572_s29  ;;  %v524_v31 = vmul.f32 %v523_v17, %v521_v16  ;;  %v545_v32 = vstv %s1576_s30  ;;  %v543_v36 = vmax.f32 %v542_v20, 0.0  ;;  %s1672_s29 = sld [smem:[#allocation7 + $0x37]]  ;;  %s1676_s30 = sld [smem:[#allocation10 + $0x34]] }
  0x99   :  { %v492_v27 = vadd.f32 %v491_v12, %v481_v19  ;;  %v564_v33 = vadd.f32 %v563_v29, %v561_v26  ;;  %v572_v34 = vmul.f32 %v571_v30, %v1179_v6  ;;  %v574_v37 = vstv %s1580_s6  ;;  %s1680_s6 = sld [smem:[#allocation8 + $0x37]] }
  0x9a   :  { %v582_v38 = vstv %s1582_s7  ;;  %v535_v39 = vmul.f32 %v534_v25, %v532_v24  ;;  %v556_v40 = vstv %s1586_s8  ;;  %v554_v44 = vmax.f32 %v553_v28, 0.0  ;;  %s1682_s7 = sld [smem:[#allocation7 + $0x38]]  ;;  %s1686_s8 = sld [smem:[#allocation10 + $0x35]] }
  0x9b   :  { %v503_v35 = vadd.f32 %v502_v15, %v492_v27  ;;  %v575_v41 = vadd.f32 %v574_v37, %v572_v34  ;;  %v583_v42 = vmul.f32 %v582_v38, %v1179_v6  ;;  %v585_v45 = vstv %s1590_s9  ;;  %s1690_s9 = sld [smem:[#allocation8 + $0x38]] }
  0x9c   :  { %v593_v46 = vstv %s1592_s1  ;;  %v565_v47 = vmax.f32 %v564_v33, 0.0  ;;  %v567_v48 = vstv %s1596_s10  ;;  %v546_v52 = vmul.f32 %v545_v32, %v543_v36  ;;  %s1692_s1 = sld [smem:[#allocation7 + $0x39]]  ;;  %s1696_s10 = sld [smem:[#allocation10 + $0x36]] }
  0x9d   :  { %v514_v43 = vadd.f32 %v513_v23, %v503_v35  ;;  %v586_v49 = vadd.f32 %v585_v45, %v583_v42  ;;  %v594_v50 = vmul.f32 %v593_v46, %v1179_v6  ;;  %v596_v53 = vstv %s1600_s11  ;;  %s1700_s11 = sld [smem:[#allocation8 + $0x39]] }
  0x9e   :  { %v604_v54 = vstv %s1602_s12  ;;  %v576_v55 = vmax.f32 %v575_v41, 0.0  ;;  %v578_v56 = vstv %s1606_s13  ;;  %v557_v60 = vmul.f32 %v556_v40, %v554_v44  ;;  %s1702_s12 = sld [smem:[#allocation7 + $0x3a]]  ;;  %s1706_s13 = sld [smem:[#allocation10 + $0x37]] }
  0x9f   :  { %v525_v51 = vadd.f32 %v524_v31, %v514_v43  ;;  %v597_v57 = vadd.f32 %v596_v53, %v594_v50  ;;  %v605_v58 = vmul.f32 %v604_v54, %v1179_v6  ;;  %v607_v61 = vstv %s1610_s14  ;;  %s1710_s14 = sld [smem:[#allocation8 + $0x3a]] }
  0xa0   :  { %v615_v62 = vstv %s1612_s15  ;;  %v568_v63 = vmul.f32 %v567_v48, %v565_v47  ;;  %v587_v0 = vmax.f32 %v586_v49, 0.0  ;;  %v589_v1 = vstv %s1616_s4  ;;  %s1712_s15 = sld [smem:[#allocation7 + $0x3b]]  ;;  %s1716_s4 = sld [smem:[#allocation10 + $0x38]] }
  0xa1   :  { %v536_v59 = vadd.f32 %v535_v39, %v525_v51  ;;  %v616_v2 = vmul.f32 %v615_v62, %v1179_v6  ;;  %v608_v4 = vadd.f32 %v607_v61, %v605_v58  ;;  %v618_v5 = vstv %s1620_s16  ;;  %s1720_s16 = sld [smem:[#allocation8 + $0x3b]] }
  0xa2   :  { %v626_v7 = vstv %s1622_s0  ;;  %v579_v8 = vmul.f32 %v578_v56, %v576_v55  ;;  %v598_v9 = vmax.f32 %v597_v57, 0.0  ;;  %v600_v10 = vstv %s1626_s3  ;;  %s1722_s0 = sld [smem:[#allocation7 + $0x3c]]  ;;  %s1726_s3 = sld [smem:[#allocation10 + $0x39]] }
  0xa3   :  { %v547_v3 = vadd.f32 %v546_v52, %v536_v59  ;;  %v627_v11 = vmul.f32 %v626_v7, %v1179_v6  ;;  %v619_v13 = vadd.f32 %v618_v5, %v616_v2  ;;  %v629_v14 = vstv %s1630_s17  ;;  %s1730_s17 = sld [smem:[#allocation8 + $0x3c]] }
  0xa4   :  { %v637_v15 = vstv %s1632_s18  ;;  %v590_v16 = vmul.f32 %v589_v1, %v587_v0  ;;  %v611_v17 = vstv %s1636_s19  ;;  %v609_v21 = vmax.f32 %v608_v4, 0.0  ;;  %s1732_s18 = sld [smem:[#allocation7 + $0x3d]]  ;;  %s1736_s19 = sld [smem:[#allocation10 + $0x3a]] }
  0xa5   :  { %v558_v12 = vadd.f32 %v557_v60, %v547_v3  ;;  %v630_v18 = vadd.f32 %v629_v14, %v627_v11  ;;  %v638_v19 = vmul.f32 %v637_v15, %v1179_v6  ;;  %v640_v22 = vstv %s1640_s20  ;;  %s1740_s20 = sld [smem:[#allocation8 + $0x3d]] }
  0xa6   :  { %v648_v23 = vstv %s1642_s21  ;;  %v601_v24 = vmul.f32 %v600_v10, %v598_v9  ;;  %v622_v25 = vstv %s1646_s22  ;;  %v620_v29 = vmax.f32 %v619_v13, 0.0  ;;  %s1742_s21 = sld [smem:[#allocation7 + $0x3e]] }
  0xa7   :  { %v569_v20 = vadd.f32 %v568_v63, %v558_v12  ;;  %v641_v26 = vadd.f32 %v640_v22, %v638_v19  ;;  %v649_v27 = vmul.f32 %v648_v23, %v1179_v6  ;;  %v651_v30 = vstv %s1650_s23  ;;  %s1748_s22 = sld [smem:[#allocation8 + $0x3e]]  ;;  %s1750_s23 = sld [smem:[#allocation7 + $0x3f]] }
  0xa8   :  { %v659_v31 = vstv %s1652_s24  ;;  %v631_v32 = vmax.f32 %v630_v18, 0.0  ;;  %v633_v33 = vstv %s1656_s25  ;;  %v612_v37 = vmul.f32 %v611_v17, %v609_v21  ;;  %s1754_s24 = sld [smem:[#allocation10 + $0x3b]]  ;;  %s1758_s25 = sld [smem:[#allocation8 + $0x3f]] }
  0xa9   :  { %v580_v28 = vadd.f32 %v579_v8, %v569_v20  ;;  %v652_v34 = vadd.f32 %v651_v30, %v649_v27  ;;  %v660_v35 = vmul.f32 %v659_v31, %v1179_v6  ;;  %v662_v38 = vstv %s1660_s26  ;;  %s1762_s26 = sld [smem:[#allocation10 + $0x3c]] }
  0xaa   :  { %v670_v39 = vstv %s1662_s27  ;;  %v642_v40 = vmax.f32 %v641_v26, 0.0  ;;  %v644_v41 = vstv %s1666_s2  ;;  %v623_v45 = vmul.f32 %v622_v25, %v620_v29  ;;  %s1768_s27 = sld [smem:[#allocation10 + $0x3d]]  ;;  %s984_s2 = sld [smem:[#allocation10 + $0x3e]] }
  0xab   :  { %v591_v36 = vadd.f32 %v590_v16, %v580_v28  ;;  %v663_v42 = vadd.f32 %v662_v38, %v660_v35  ;;  %v671_v43 = vmul.f32 %v670_v39, %v1179_v6  ;;  %v673_v46 = vstv %s1670_s28  ;;  %s987_s28 = sld [smem:[#allocation10 + $0x3f]] }
  0xac   :  { %v681_v47 = vstv %s1672_s29  ;;  %v634_v48 = vmul.f32 %v633_v33, %v631_v32  ;;  %v653_v49 = vmax.f32 %v652_v34, 0.0  ;;  %v655_v50 = vstv %s1676_s30  ;;  %s1089_s29 = smov [#allocation11]  }
  0xad   :  { %v602_v44 = vadd.f32 %v601_v24, %v591_v36  ;;  %v682_v51 = vmul.f32 %v681_v47, %v1179_v6  ;;  %v674_v53 = vadd.f32 %v673_v46, %v671_v43  ;;  %v684_v54 = vstv %s1680_s6  ;;  %s788_s30 = sshll.u32 %s1089_s29, 4  ;;  %s789_s30 = int_to_ptr.vmem [resolvable:$true] %s788_s30 }
  0xae   :  { %v692_v55 = vstv %s1682_s7  ;;  %v645_v56 = vmul.f32 %v644_v41, %v642_v40  ;;  %v664_v57 = vmax.f32 %v663_v42, 0.0  ;;  %v666_v58 = vstv %s1686_s8  ;;  %s1055_s6 = scalar_lea.vmem %s789_s30, 128  ;;  %p1060_p10 = scmp.lt.s32.totalorder %s789_s30, %s789_s30 }
  0xaf   :  { %v613_v52 = vadd.f32 %v612_v37, %v602_v44  ;;  %v693_v59 = vmul.f32 %v692_v55, %v1179_v6  ;;  %v685_v61 = vadd.f32 %v684_v54, %v682_v51  ;;  %v695_v62 = vstv %s1690_s9  ;;  %p1056_p9 = scmp.ne.s32.totalorder %s789_s30, %s1055_s6  ;;  %p1061_p11 = scmp.lt.s32.totalorder %s1055_s6, %s1055_s6 }
  0xb0   :  { %v703_v63 = vstv %s1692_s1  ;;  %v656_v0 = vmul.f32 %v655_v50, %v653_v49  ;;  %v677_v1 = vstv %s1696_s10  ;;  %v675_v5 = vmax.f32 %v674_v53, 0.0 }
  0xb1   :  { %v624_v60 = vadd.f32 %v623_v45, %v613_v52  ;;  %v696_v2 = vadd.f32 %v695_v62, %v693_v59  ;;  %v704_v3 = vmul.f32 %v703_v63, %v1179_v6  ;;  %v706_v7 = vstv %s1700_s11  ;;  %p1062_p12 = por %p1061_p11, %p1060_p10 }
  0xb2   :  { %v714_v8 = vstv %s1702_s12  ;;  %v667_v9 = vmul.f32 %v666_v58, %v664_v57  ;;  %v688_v10 = vstv %s1706_s13  ;;  %v686_v14 = vmax.f32 %v685_v61, 0.0 }
  0xb3   :  { %v635_v4 = vadd.f32 %v634_v48, %v624_v60  ;;  %v707_v11 = vadd.f32 %v706_v7, %v704_v3  ;;  %v715_v12 = vmul.f32 %v714_v8, %v1179_v6  ;;  %v717_v15 = vstv %s1710_s14  ;;  %p1063_p13 = pnand %p1062_p12, %p1056_p9 }
  0xb4   :  { %v725_v16 = vstv %s1712_s15  ;;  %v697_v17 = vmax.f32 %v696_v2, 0.0  ;;  %v699_v18 = vstv %s1716_s4  ;;  %v678_v22 = vmul.f32 %v677_v1, %v675_v5 }
  0xb5   :  { %v646_v13 = vadd.f32 %v645_v56, %v635_v4  ;;  %v718_v19 = vadd.f32 %v717_v15, %v715_v12  ;;  %v726_v20 = vmul.f32 %v725_v16, %v1179_v6  ;;  %v728_v23 = vstv %s1720_s16 }
  0xb6   :  { %v736_v24 = vstv %s1722_s0  ;;  %v708_v25 = vmax.f32 %v707_v11, 0.0  ;;  %v710_v26 = vstv %s1726_s3  ;;  %v689_v30 = vmul.f32 %v688_v10, %v686_v14 }
  0xb7   :  { %v657_v21 = vadd.f32 %v656_v0, %v646_v13  ;;  %v729_v27 = vadd.f32 %v728_v23, %v726_v20  ;;  %v737_v28 = vmul.f32 %v736_v24, %v1179_v6  ;;  %v739_v31 = vstv %s1730_s17 }
  0xb8   :  { %v747_v32 = vstv %s1732_s18  ;;  %v700_v33 = vmul.f32 %v699_v18, %v697_v17  ;;  %v719_v34 = vmax.f32 %v718_v19, 0.0  ;;  %v721_v35 = vstv %s1736_s19 }
  0xb9   :  { %v668_v29 = vadd.f32 %v667_v9, %v657_v21  ;;  %v748_v36 = vmul.f32 %v747_v32, %v1179_v6  ;;  %v740_v38 = vadd.f32 %v739_v31, %v737_v28  ;;  %v750_v39 = vstv %s1740_s20 }
  0xba   :  { %v758_v40 = vstv %s1742_s21  ;;  %v711_v41 = vmul.f32 %v710_v26, %v708_v25  ;;  %v730_v42 = vmax.f32 %v729_v27, 0.0  ;;  %v761_v46 = vstv %s1748_s22 }
  0xbb   :  { %v679_v37 = vadd.f32 %v678_v22, %v668_v29  ;;  %v759_v43 = vmul.f32 %v758_v40, %v1179_v6  ;;  %v751_v45 = vadd.f32 %v750_v39, %v748_v36  ;;  %v769_v47 = vstv %s1750_s23 }
  0xbc   :  { %v722_v48 = vmul.f32 %v721_v35, %v719_v34  ;;  %v732_v49 = vstv %s1754_s24  ;;  %v770_v50 = vmul.f32 %v769_v47, %v1179_v6  ;;  %v741_v52 = vmax.f32 %v740_v38, 0.0 }
  0xbd   :  { %v690_v44 = vadd.f32 %v689_v30, %v679_v37  ;;  %v762_v53 = vadd.f32 %v761_v46, %v759_v43  ;;  %v772_v54 = vstv %s1758_s25  ;;  %v743_v55 = vstv %s1762_s26 }
  0xbe   :  { %v733_v57 = vmul.f32 %v732_v49, %v730_v42  ;;  %v752_v58 = vmax.f32 %v751_v45, 0.0  ;;  %v773_v59 = vadd.f32 %v772_v54, %v770_v50  ;;  %v754_v60 = vstv %s1768_s27 }
  0xbf   :  { %v701_v51 = vadd.f32 %v700_v33, %v690_v44  ;;  %v744_v62 = vmul.f32 %v743_v55, %v741_v52  ;;  %v763_v63 = vmax.f32 %v762_v53, 0.0  ;;  %v765_v0 = vstv %s984_s2 }
  0xc0   :  { %v755_v2 = vmul.f32 %v754_v60, %v752_v58  ;;  %v774_v3 = vmax.f32 %v773_v59, 0.0  ;;  %v776_v4 = vstv %s987_s28 }
  0xc1   :  { %v712_v56 = vadd.f32 %v711_v41, %v701_v51  ;;  %v766_v5 = vmul.f32 %v765_v0, %v763_v63 }
  0xc2   :  { %v777_v8 = vmul.f32 %v776_v4, %v774_v3 }
  0xc3   :  { %v723_v61 = vadd.f32 %v722_v48, %v712_v56 }
  0xc5   :  { %v734_v1 = vadd.f32 %v733_v57, %v723_v61 }
  0xc7   :  { %v745_v6 = vadd.f32 %v744_v62, %v734_v1 }
  0xc9   :  { %v756_v7 = vadd.f32 %v755_v2, %v745_v6 }
  0xcb   :  { %v767_v9 = vadd.f32 %v766_v5, %v756_v7 }
  0xcd   :  { %v778_v10 = vadd.f32 %v777_v8, %v767_v9 }
  0xcf   :  { %v779_v11 = vmul.f32 1.442695, %v778_v10 }
  0xd1   :  { %995 = vpow2.f32 %v779_v11 }
  0xdb   :  { %v996_v12 = vpop.eup %995 }
  0xdc   :  { %781 = vst [vmem:[#allocation11] sm:$0xff] %v996_v12 }
  0xdd   :  { %1066 = shalt.err (!%p1063_p13)
}
  0xde   :  { %s1067_s9 = scalar_lea.hbm %s1797_s5, 128 }
  0xdf   :  { %p1068_p0 = scmp.ne.s32.totalorder %s1797_s5, %s1067_s9  ;;  %p1071_p1 = scmp.lt.u32.totalorder %s1067_s9, %s1797_s5 }
  0xe1   :  { %p1073_p2 = pnand %p1071_p1, %p1068_p0 }
  0xe3   :  { %1076 = shalt.err (!%p1073_p2)
}
  0xe4   :  { %791 = dma.vmem_to_hbm [thread:$0]  %s789_s30, 128, %s1797_s5, [#allocation5]  }
  0xe5   :  { %1083 = dma.done.wait [#allocation5], 128  }
  0xe6   :  { %1084 = vsyncadd [#allocation5], 4294967168 }
  0xe7   :  { %795 = vsyncpa [#allocation4], 1 }
  0xe8   :  { %796 = vsyncpa [#allocation5], 1 }
  0xe9   :  { %797 = vsyncpa [#allocation6], 1 }
  0xea   :  { %798 = vsyncpa [#allocation9], 1 }

</bundles_post_ra>
